<compile_context>
chip_gen: v5e
topology: v5e:2x2
jax: 0.10.0
libtpu: 0.0.40
codegen_flags: <defaults>
</compile_context>

<pallas_src>
import jax
import jax.numpy as jnp
from jax.experimental import pallas as pl
from jax.experimental.pallas import tpu as pltpu

SEG = 128           # per-gate lane segment (one full vreg lane width)
GATES = 3 * SEG     # [ r | z | n ] segments


def teacher_gnn_kernel(adj_ref, featsT_ref, consts_ref, w_h_ref, cls_w_ref, out_ref):
    # Row-tile graph aggregation for all timesteps: A[:, t] = adj_rows @ features[t].
    # adj_ref: (TILE_N, N_pad) bf16, featsT_ref: (N_pad, T) bf16 -> f32 accumulate.
    A = jnp.dot(adj_ref[...], featsT_ref[...],
                preferred_element_type=jnp.float32)                 # (TILE_N, T) f32

    consts = consts_ref[...]                                        # (4, 3*SEG) f32
    v = consts[0:1, :]                                              # folded input weights
    c = consts[1:2, :]                                              # folded input const (incl. b_ih)
    b_h = consts[2:3, :]                                            # b_hh (segment layout)
    cls_b = consts[3:4, 0:SEG]                                      # classifier bias (lane-dense)

    w_h = w_h_ref[...]                                              # (SEG, 3*SEG)
    cls_w = cls_w_ref[...]                                          # (SEG, SEG)

    tile_n, T = A.shape
    h = jnp.zeros((tile_n, SEG), jnp.float32)                       # pad lanes stay exactly 0

    # seq_len is small & static -> Python unroll over the serial dependence.
    # TODO(synk): switch to lax.fori_loop with h as carry if seq_len grows past ~16.
    for t in range(T):
        a_t = A[:, t:t + 1]                                         # (TILE_N, 1)
        gi = a_t * v + c                                            # (TILE_N, 3*SEG), VPU only
        gh = jnp.dot(h, w_h, preferred_element_type=jnp.float32) + b_h

        # Each gate owns a whole 128-lane segment -> slices at lane offset 0,
        # no cross-lane realignment on the latency-critical chain.
        r = jax.nn.sigmoid(gi[:, 0:SEG] + gh[:, 0:SEG])
        z = jax.nn.sigmoid(gi[:, SEG:2 * SEG] + gh[:, SEG:2 * SEG])
        n = jnp.tanh(gi[:, 2 * SEG:3 * SEG] + r * gh[:, 2 * SEG:3 * SEG])
        h = (1.0 - z) * n + z * h                                   # (TILE_N, SEG)

    out_ref[...] = (
        jnp.dot(h, cls_w, preferred_element_type=jnp.float32) + cls_b
    )                                                               # (TILE_N, SEG) lane-dense


def teacher_gnn_forward(features, adj, params):
    """features: (seq_len, N), adj: (N, N) -> logits (N, output_dim)."""
    T, N = features.shape
    H, in_dim = params["gcn_w"].shape
    assert in_dim == 1, "kernel folds the GCN linear assuming input_dim == 1"
    G = params["w_hh"].shape[1]
    O = params["cls_w"].shape[0]
    assert G <= SEG and O <= SEG

    f32 = jnp.float32

    # ---- Fold GCN (rank-1, input_dim==1) + GRU input path:  gi_t = a_t * v + c ----
    w_ih_T = params["w_ih"].astype(f32).T                            # (H, 3G)
    v_raw = params["gcn_w"][:, 0].astype(f32) @ w_ih_T               # (3G,)
    c_raw = params["gcn_b"].astype(f32) @ w_ih_T + params["b_ih"].astype(f32)
    bh_raw = params["b_hh"].astype(f32)                              # (3G,)

    def seg_pad_vec(x3g):
        """(3G,) gate vector -> (3*SEG,) with gate g in lanes [g*SEG, g*SEG+G)."""
        out = jnp.zeros((GATES,), f32)
        for g in range(3):
            out = out.at[g * SEG: g * SEG + G].set(x3g[g * G:(g + 1) * G])
        return out

    consts = jnp.stack(
        [
            seg_pad_vec(v_raw),
            seg_pad_vec(c_raw),
            seg_pad_vec(bh_raw),
            jnp.zeros((GATES,), f32).at[:O].set(params["cls_b"].astype(f32)),
        ],
        axis=0,
    )                                                                # (4, 3*SEG)

    # Fused hidden weights, segment layout: block [0:G, g*SEG:g*SEG+G] = W_hh_g^T.
    w_hh_T = params["w_hh"].astype(f32).T                            # (G, 3G)
    w_h = jnp.zeros((SEG, GATES), f32)
    for g in range(3):
        w_h = w_h.at[0:G, g * SEG: g * SEG + G].set(w_hh_T[:, g * G:(g + 1) * G])

    cls_w = jnp.zeros((SEG, SEG), f32).at[0:G, 0:O].set(params["cls_w"].astype(f32).T)

    # ---- Node-row tiling (pad N so row tiles divide evenly) ----
    def round_up(x, m):
        return ((x + m - 1) // m) * m

    n8 = round_up(N, 8)
    if n8 <= 256:
        tile_n, n_pad = n8, n8
    else:
        tile_n, n_pad = 256, round_up(N, 256)
    grid = (n_pad // tile_n,)

    bf16 = jnp.bfloat16
    adj_p = jnp.zeros((n_pad, n_pad), bf16).at[:N, :N].set(adj.astype(bf16))
    featsT_p = jnp.zeros((n_pad, T), bf16).at[:N, :].set(features.T.astype(bf16))

    out_pad = pl.pallas_call(
        teacher_gnn_kernel,
        out_shape=jax.ShapeDtypeStruct((n_pad, SEG), jnp.float32),
        grid_spec=pltpu.PrefetchScalarGridSpec(
            num_scalar_prefetch=0,
            grid=grid,
            in_specs=[
                pl.BlockSpec((tile_n, n_pad), lambda i: (i, 0)),     # adj row-block (streamed)
                pl.BlockSpec((n_pad, T), lambda i: (0, 0)),          # featsT, whole (tiny)
                pl.BlockSpec((4, GATES), lambda i: (0, 0)),          # folded constants
                pl.BlockSpec((SEG, GATES), lambda i: (0, 0)),        # fused hidden weights
                pl.BlockSpec((SEG, SEG), lambda i: (0, 0)),          # classifier weights
            ],
            out_specs=pl.BlockSpec((tile_n, SEG), lambda i: (i, 0)),
        ),
        compiler_params=pltpu.CompilerParams(
            dimension_semantics=("parallel",),                       # rows independent -> 2 TCs on v7x
        ),
    )(adj_p, featsT_p, consts, w_h, cls_w)
    return out_pad[:N, :O]


def reference_forward(features, adj, params, agg_dtype=jnp.float32):
    """Pure-JAX mirror of the PyTorch forward.

    agg_dtype controls the precision of the adj @ x aggregation inputs so the
    bf16-aggregation kernel can be validated tightly.
    """
    T, N = features.shape
    G = params["w_hh"].shape[1]
    adj_c = adj.astype(agg_dtype)
    hs = []
    for t in range(T):
        a = jnp.dot(adj_c, features[t].astype(agg_dtype)[:, None],
                    preferred_element_type=jnp.float32)              # (N, 1)
        h = a @ params["gcn_w"].T + params["gcn_b"]                  # (N, H)
        hs.append(h)
    hs = jnp.stack(hs, axis=0).transpose(1, 0, 2)                    # (N, T, H)
    hprev = jnp.zeros((N, G), jnp.float32)
    for t in range(T):
        x = hs[:, t, :]
        gi = x @ params["w_ih"].T + params["b_ih"]
        gh = hprev @ params["w_hh"].T + params["b_hh"]
        i_r, i_z, i_n = jnp.split(gi, 3, axis=1)
        h_r, h_z, h_n = jnp.split(gh, 3, axis=1)
        r = jax.nn.sigmoid(i_r + h_r)
        z = jax.nn.sigmoid(i_z + h_z)
        n = jnp.tanh(i_n + r * h_n)
        hprev = (1.0 - z) * n + z * hprev
    return hprev @ params["cls_w"].T + params["cls_b"]


if __name__ == "__main__":
    # Small shapes implied by the forward: features (seq_len, N); gcn input_dim = 1.
    T, N = 8, 16
    input_dim, hidden_dim, gru_hidden_dim, output_dim = 1, 32, 32, 4

    key = jax.random.PRNGKey(0)
    keys = jax.random.split(key, 10)

    def uni(k, shape, fan_in):
        bound = 1.0 / jnp.sqrt(jnp.float32(fan_in))
        return jax.random.uniform(k, shape, jnp.float32, -bound, bound)

    params = {
        "gcn_w": uni(keys[0], (hidden_dim, input_dim), input_dim),
        "gcn_b": uni(keys[1], (hidden_dim,), input_dim),
        "w_ih": uni(keys[2], (3 * gru_hidden_dim, hidden_dim), gru_hidden_dim),
        "w_hh": uni(keys[3], (3 * gru_hidden_dim, gru_hidden_dim), gru_hidden_dim),
        "b_ih": uni(keys[4], (3 * gru_hidden_dim,), gru_hidden_dim),
        "b_hh": uni(keys[5], (3 * gru_hidden_dim,), gru_hidden_dim),
        "cls_w": uni(keys[6], (output_dim, gru_hidden_dim), gru_hidden_dim),
        "cls_b": uni(keys[7], (output_dim,), gru_hidden_dim),
    }

    features = jax.random.normal(keys[8], (T, N), jnp.float32)
    adj = (jax.random.uniform(keys[9], (N, N)) < 0.3).astype(jnp.float32) + jnp.eye(
        N, dtype=jnp.float32
    )

    logits = teacher_gnn_forward(features, adj, params)
    logits = jax.block_until_ready(logits)
    assert logits.shape == (N, output_dim)

    # Tight check against a reference with the same bf16 aggregation numerics.
    ref_bf16 = reference_forward(features, adj, params, agg_dtype=jnp.bfloat16)
    err_bf16 = float(jnp.max(jnp.abs(logits - ref_bf16)))
    assert jnp.allclose(logits, ref_bf16, atol=1e-3, rtol=1e-3), err_bf16

    # Loose sanity check against the full-f32 reference (bf16 aggregation inputs
    # cost a few 1e-3 of absolute error at these magnitudes).
    ref_f32 = reference_forward(features, adj, params, agg_dtype=jnp.float32)
    err_f32 = float(jnp.max(jnp.abs(logits - ref_f32)))
    assert jnp.allclose(logits, ref_f32, atol=5e-2, rtol=5e-2), err_f32

    print("KERNEL_OK")
</pallas_src>

<mosaic_0001>
module attributes {stable_mosaic.version = 11 : i64} {
  func.func @teacher_gnn_kernel(%arg0: i32, %arg1: memref<16x16xbf16, #tpu.memory_space<vmem>>, %arg2: memref<16x8xbf16, #tpu.memory_space<vmem>>, %arg3: memref<4x384xf32, #tpu.memory_space<vmem>>, %arg4: memref<128x384xf32, #tpu.memory_space<vmem>>, %arg5: memref<128x128xf32, #tpu.memory_space<vmem>>, %arg6: memref<16x128xf32, #tpu.memory_space<vmem>>) attributes {dimension_semantics = [#tpu.dimension_semantics<parallel>], iteration_bounds = array<i64: 1>, scalar_prefetch = 0 : i64, scratch_operands = 0 : i64, tpu.core_type = #tpu.core_type<tc>, window_params = [{transform_indices = @transform_0, window_bounds = array<i64: 16, 16>}, {pipeline_mode = #tpu.pipeline_mode<synchronous>, transform_indices = @transform_1, window_bounds = array<i64: 16, 8>}, {pipeline_mode = #tpu.pipeline_mode<synchronous>, transform_indices = @transform_2, window_bounds = array<i64: 4, 384>}, {pipeline_mode = #tpu.pipeline_mode<synchronous>, transform_indices = @transform_3, window_bounds = array<i64: 128, 384>}, {pipeline_mode = #tpu.pipeline_mode<synchronous>, transform_indices = @transform_4, window_bounds = array<i64: 128, 128>}, {transform_indices = @transform_5, window_bounds = array<i64: 16, 128>}]} {
    %c0 = arith.constant 0 : index
    %c0_0 = arith.constant 0 : index
    %0 = vector.load %arg1[%c0, %c0_0] : memref<16x16xbf16, #tpu.memory_space<vmem>>, vector<16x16xbf16>
    %c0_1 = arith.constant 0 : index
    %c0_2 = arith.constant 0 : index
    %1 = vector.load %arg2[%c0_1, %c0_2] : memref<16x8xbf16, #tpu.memory_space<vmem>>, vector<16x8xbf16>
    %cst = arith.constant dense<0.000000e+00> : vector<16x8xf32>
    %2 = tpu.matmul %0, %1, %cst {dimension_numbers = #tpu.dot_dimension_numbers<[1], [0], [0], [1], [0, 0, 1, 1], [], []>} : vector<16x16xbf16>, vector<16x8xbf16>, vector<16x8xf32> -> vector<16x8xf32>
    %c0_3 = arith.constant 0 : index
    %c0_4 = arith.constant 0 : index
    %3 = vector.load %arg3[%c0_3, %c0_4] : memref<4x384xf32, #tpu.memory_space<vmem>>, vector<4x384xf32>
    %4 = vector.extract_strided_slice %3 {offsets = [0, 0], sizes = [1, 384], strides = [1, 1]} : vector<4x384xf32> to vector<1x384xf32>
    %5 = vector.extract_strided_slice %3 {offsets = [1, 0], sizes = [1, 384], strides = [1, 1]} : vector<4x384xf32> to vector<1x384xf32>
    %6 = vector.extract_strided_slice %3 {offsets = [2, 0], sizes = [1, 384], strides = [1, 1]} : vector<4x384xf32> to vector<1x384xf32>
    %7 = vector.extract_strided_slice %3 {offsets = [3, 0], sizes = [1, 128], strides = [1, 1]} : vector<4x384xf32> to vector<1x128xf32>
    %c0_5 = arith.constant 0 : index
    %c0_6 = arith.constant 0 : index
    %8 = vector.load %arg4[%c0_5, %c0_6] : memref<128x384xf32, #tpu.memory_space<vmem>>, vector<128x384xf32>
    %c0_7 = arith.constant 0 : index
    %c0_8 = arith.constant 0 : index
    %9 = vector.load %arg5[%c0_7, %c0_8] : memref<128x128xf32, #tpu.memory_space<vmem>>, vector<128x128xf32>
    %cst_9 = arith.constant 0.000000e+00 : f32
    %10 = vector.broadcast %cst_9 : f32 to vector<16x128xf32>
    %11 = vector.extract_strided_slice %2 {offsets = [0, 0], sizes = [16, 1], strides = [1, 1]} : vector<16x8xf32> to vector<16x1xf32>
    %12 = vector.broadcast %11 : vector<16x1xf32> to vector<16x384xf32>
    %13 = vector.broadcast %4 : vector<1x384xf32> to vector<16x384xf32>
    %14 = arith.mulf %12, %13 : vector<16x384xf32>
    %15 = vector.broadcast %5 : vector<1x384xf32> to vector<16x384xf32>
    %16 = arith.addf %14, %15 : vector<16x384xf32>
    %cst_10 = arith.constant dense<0.000000e+00> : vector<16x384xf32>
    %17 = tpu.matmul %10, %8, %cst_10 {dimension_numbers = #tpu.dot_dimension_numbers<[1], [0], [0], [1], [0, 0, 1, 1], [], []>} : vector<16x128xf32>, vector<128x384xf32>, vector<16x384xf32> -> vector<16x384xf32>
    %18 = vector.broadcast %6 : vector<1x384xf32> to vector<16x384xf32>
    %19 = arith.addf %17, %18 : vector<16x384xf32>
    %20 = vector.extract_strided_slice %16 {offsets = [0, 0], sizes = [16, 128], strides = [1, 1]} : vector<16x384xf32> to vector<16x128xf32>
    %21 = vector.extract_strided_slice %19 {offsets = [0, 0], sizes = [16, 128], strides = [1, 1]} : vector<16x384xf32> to vector<16x128xf32>
    %22 = arith.addf %20, %21 : vector<16x128xf32>
    %23 = arith.negf %22 : vector<16x128xf32>
    %24 = math.exp %23 : vector<16x128xf32>
    %cst_11 = arith.constant 1.000000e+00 : f32
    %25 = vector.broadcast %cst_11 : f32 to vector<16x128xf32>
    %26 = arith.addf %25, %24 : vector<16x128xf32>
    %27 = arith.divf %25, %26 : vector<16x128xf32>
    %28 = vector.extract_strided_slice %16 {offsets = [0, 128], sizes = [16, 128], strides = [1, 1]} : vector<16x384xf32> to vector<16x128xf32>
    %29 = vector.extract_strided_slice %19 {offsets = [0, 128], sizes = [16, 128], strides = [1, 1]} : vector<16x384xf32> to vector<16x128xf32>
    %30 = arith.addf %28, %29 : vector<16x128xf32>
    %31 = arith.negf %30 : vector<16x128xf32>
    %32 = math.exp %31 : vector<16x128xf32>
    %cst_12 = arith.constant 1.000000e+00 : f32
    %33 = vector.broadcast %cst_12 : f32 to vector<16x128xf32>
    %34 = arith.addf %33, %32 : vector<16x128xf32>
    %35 = arith.divf %33, %34 : vector<16x128xf32>
    %36 = vector.extract_strided_slice %16 {offsets = [0, 256], sizes = [16, 128], strides = [1, 1]} : vector<16x384xf32> to vector<16x128xf32>
    %37 = vector.extract_strided_slice %19 {offsets = [0, 256], sizes = [16, 128], strides = [1, 1]} : vector<16x384xf32> to vector<16x128xf32>
    %38 = arith.mulf %27, %37 : vector<16x128xf32>
    %39 = arith.addf %36, %38 : vector<16x128xf32>
    %40 = math.tanh %39 : vector<16x128xf32>
    %cst_13 = arith.constant 1.000000e+00 : f32
    %41 = vector.broadcast %cst_13 : f32 to vector<16x128xf32>
    %42 = arith.subf %41, %35 : vector<16x128xf32>
    %43 = arith.mulf %42, %40 : vector<16x128xf32>
    %44 = arith.mulf %35, %10 : vector<16x128xf32>
    %45 = arith.addf %43, %44 : vector<16x128xf32>
    %46 = vector.extract_strided_slice %2 {offsets = [0, 1], sizes = [16, 1], strides = [1, 1]} : vector<16x8xf32> to vector<16x1xf32>
    %47 = vector.broadcast %46 : vector<16x1xf32> to vector<16x384xf32>
    %48 = vector.broadcast %4 : vector<1x384xf32> to vector<16x384xf32>
    %49 = arith.mulf %47, %48 : vector<16x384xf32>
    %50 = vector.broadcast %5 : vector<1x384xf32> to vector<16x384xf32>
    %51 = arith.addf %49, %50 : vector<16x384xf32>
    %cst_14 = arith.constant dense<0.000000e+00> : vector<16x384xf32>
    %52 = tpu.matmul %45, %8, %cst_14 {dimension_numbers = #tpu.dot_dimension_numbers<[1], [0], [0], [1], [0, 0, 1, 1], [], []>} : vector<16x128xf32>, vector<128x384xf32>, vector<16x384xf32> -> vector<16x384xf32>
    %53 = vector.broadcast %6 : vector<1x384xf32> to vector<16x384xf32>
    %54 = arith.addf %52, %53 : vector<16x384xf32>
    %55 = vector.extract_strided_slice %51 {offsets = [0, 0], sizes = [16, 128], strides = [1, 1]} : vector<16x384xf32> to vector<16x128xf32>
    %56 = vector.extract_strided_slice %54 {offsets = [0, 0], sizes = [16, 128], strides = [1, 1]} : vector<16x384xf32> to vector<16x128xf32>
    %57 = arith.addf %55, %56 : vector<16x128xf32>
    %58 = arith.negf %57 : vector<16x128xf32>
    %59 = math.exp %58 : vector<16x128xf32>
    %cst_15 = arith.constant 1.000000e+00 : f32
    %60 = vector.broadcast %cst_15 : f32 to vector<16x128xf32>
    %61 = arith.addf %60, %59 : vector<16x128xf32>
    %62 = arith.divf %60, %61 : vector<16x128xf32>
    %63 = vector.extract_strided_slice %51 {offsets = [0, 128], sizes = [16, 128], strides = [1, 1]} : vector<16x384xf32> to vector<16x128xf32>
    %64 = vector.extract_strided_slice %54 {offsets = [0, 128], sizes = [16, 128], strides = [1, 1]} : vector<16x384xf32> to vector<16x128xf32>
    %65 = arith.addf %63, %64 : vector<16x128xf32>
    %66 = arith.negf %65 : vector<16x128xf32>
    %67 = math.exp %66 : vector<16x128xf32>
    %cst_16 = arith.constant 1.000000e+00 : f32
    %68 = vector.broadcast %cst_16 : f32 to vector<16x128xf32>
    %69 = arith.addf %68, %67 : vector<16x128xf32>
    %70 = arith.divf %68, %69 : vector<16x128xf32>
    %71 = vector.extract_strided_slice %51 {offsets = [0, 256], sizes = [16, 128], strides = [1, 1]} : vector<16x384xf32> to vector<16x128xf32>
    %72 = vector.extract_strided_slice %54 {offsets = [0, 256], sizes = [16, 128], strides = [1, 1]} : vector<16x384xf32> to vector<16x128xf32>
    %73 = arith.mulf %62, %72 : vector<16x128xf32>
    %74 = arith.addf %71, %73 : vector<16x128xf32>
    %75 = math.tanh %74 : vector<16x128xf32>
    %cst_17 = arith.constant 1.000000e+00 : f32
    %76 = vector.broadcast %cst_17 : f32 to vector<16x128xf32>
    %77 = arith.subf %76, %70 : vector<16x128xf32>
    %78 = arith.mulf %77, %75 : vector<16x128xf32>
    %79 = arith.mulf %70, %45 : vector<16x128xf32>
    %80 = arith.addf %78, %79 : vector<16x128xf32>
    %81 = vector.extract_strided_slice %2 {offsets = [0, 2], sizes = [16, 1], strides = [1, 1]} : vector<16x8xf32> to vector<16x1xf32>
    %82 = vector.broadcast %81 : vector<16x1xf32> to vector<16x384xf32>
    %83 = vector.broadcast %4 : vector<1x384xf32> to vector<16x384xf32>
    %84 = arith.mulf %82, %83 : vector<16x384xf32>
    %85 = vector.broadcast %5 : vector<1x384xf32> to vector<16x384xf32>
    %86 = arith.addf %84, %85 : vector<16x384xf32>
    %cst_18 = arith.constant dense<0.000000e+00> : vector<16x384xf32>
    %87 = tpu.matmul %80, %8, %cst_18 {dimension_numbers = #tpu.dot_dimension_numbers<[1], [0], [0], [1], [0, 0, 1, 1], [], []>} : vector<16x128xf32>, vector<128x384xf32>, vector<16x384xf32> -> vector<16x384xf32>
    %88 = vector.broadcast %6 : vector<1x384xf32> to vector<16x384xf32>
    %89 = arith.addf %87, %88 : vector<16x384xf32>
    %90 = vector.extract_strided_slice %86 {offsets = [0, 0], sizes = [16, 128], strides = [1, 1]} : vector<16x384xf32> to vector<16x128xf32>
    %91 = vector.extract_strided_slice %89 {offsets = [0, 0], sizes = [16, 128], strides = [1, 1]} : vector<16x384xf32> to vector<16x128xf32>
    %92 = arith.addf %90, %91 : vector<16x128xf32>
    %93 = arith.negf %92 : vector<16x128xf32>
    %94 = math.exp %93 : vector<16x128xf32>
    %cst_19 = arith.constant 1.000000e+00 : f32
    %95 = vector.broadcast %cst_19 : f32 to vector<16x128xf32>
    %96 = arith.addf %95, %94 : vector<16x128xf32>
    %97 = arith.divf %95, %96 : vector<16x128xf32>
    %98 = vector.extract_strided_slice %86 {offsets = [0, 128], sizes = [16, 128], strides = [1, 1]} : vector<16x384xf32> to vector<16x128xf32>
    %99 = vector.extract_strided_slice %89 {offsets = [0, 128], sizes = [16, 128], strides = [1, 1]} : vector<16x384xf32> to vector<16x128xf32>
    %100 = arith.addf %98, %99 : vector<16x128xf32>
    %101 = arith.negf %100 : vector<16x128xf32>
    %102 = math.exp %101 : vector<16x128xf32>
    %cst_20 = arith.constant 1.000000e+00 : f32
    %103 = vector.broadcast %cst_20 : f32 to vector<16x128xf32>
    %104 = arith.addf %103, %102 : vector<16x128xf32>
    %105 = arith.divf %103, %104 : vector<16x128xf32>
    %106 = vector.extract_strided_slice %86 {offsets = [0, 256], sizes = [16, 128], strides = [1, 1]} : vector<16x384xf32> to vector<16x128xf32>
    %107 = vector.extract_strided_slice %89 {offsets = [0, 256], sizes = [16, 128], strides = [1, 1]} : vector<16x384xf32> to vector<16x128xf32>
    %108 = arith.mulf %97, %107 : vector<16x128xf32>
    %109 = arith.addf %106, %108 : vector<16x128xf32>
    %110 = math.tanh %109 : vector<16x128xf32>
    %cst_21 = arith.constant 1.000000e+00 : f32
    %111 = vector.broadcast %cst_21 : f32 to vector<16x128xf32>
    %112 = arith.subf %111, %105 : vector<16x128xf32>
    %113 = arith.mulf %112, %110 : vector<16x128xf32>
    %114 = arith.mulf %105, %80 : vector<16x128xf32>
    %115 = arith.addf %113, %114 : vector<16x128xf32>
    %116 = vector.extract_strided_slice %2 {offsets = [0, 3], sizes = [16, 1], strides = [1, 1]} : vector<16x8xf32> to vector<16x1xf32>
    %117 = vector.broadcast %116 : vector<16x1xf32> to vector<16x384xf32>
    %118 = vector.broadcast %4 : vector<1x384xf32> to vector<16x384xf32>
    %119 = arith.mulf %117, %118 : vector<16x384xf32>
    %120 = vector.broadcast %5 : vector<1x384xf32> to vector<16x384xf32>
    %121 = arith.addf %119, %120 : vector<16x384xf32>
    %cst_22 = arith.constant dense<0.000000e+00> : vector<16x384xf32>
    %122 = tpu.matmul %115, %8, %cst_22 {dimension_numbers = #tpu.dot_dimension_numbers<[1], [0], [0], [1], [0, 0, 1, 1], [], []>} : vector<16x128xf32>, vector<128x384xf32>, vector<16x384xf32> -> vector<16x384xf32>
    %123 = vector.broadcast %6 : vector<1x384xf32> to vector<16x384xf32>
    %124 = arith.addf %122, %123 : vector<16x384xf32>
    %125 = vector.extract_strided_slice %121 {offsets = [0, 0], sizes = [16, 128], strides = [1, 1]} : vector<16x384xf32> to vector<16x128xf32>
    %126 = vector.extract_strided_slice %124 {offsets = [0, 0], sizes = [16, 128], strides = [1, 1]} : vector<16x384xf32> to vector<16x128xf32>
    %127 = arith.addf %125, %126 : vector<16x128xf32>
    %128 = arith.negf %127 : vector<16x128xf32>
    %129 = math.exp %128 : vector<16x128xf32>
    %cst_23 = arith.constant 1.000000e+00 : f32
    %130 = vector.broadcast %cst_23 : f32 to vector<16x128xf32>
    %131 = arith.addf %130, %129 : vector<16x128xf32>
    %132 = arith.divf %130, %131 : vector<16x128xf32>
    %133 = vector.extract_strided_slice %121 {offsets = [0, 128], sizes = [16, 128], strides = [1, 1]} : vector<16x384xf32> to vector<16x128xf32>
    %134 = vector.extract_strided_slice %124 {offsets = [0, 128], sizes = [16, 128], strides = [1, 1]} : vector<16x384xf32> to vector<16x128xf32>
    %135 = arith.addf %133, %134 : vector<16x128xf32>
    %136 = arith.negf %135 : vector<16x128xf32>
    %137 = math.exp %136 : vector<16x128xf32>
    %cst_24 = arith.constant 1.000000e+00 : f32
    %138 = vector.broadcast %cst_24 : f32 to vector<16x128xf32>
    %139 = arith.addf %138, %137 : vector<16x128xf32>
    %140 = arith.divf %138, %139 : vector<16x128xf32>
    %141 = vector.extract_strided_slice %121 {offsets = [0, 256], sizes = [16, 128], strides = [1, 1]} : vector<16x384xf32> to vector<16x128xf32>
    %142 = vector.extract_strided_slice %124 {offsets = [0, 256], sizes = [16, 128], strides = [1, 1]} : vector<16x384xf32> to vector<16x128xf32>
    %143 = arith.mulf %132, %142 : vector<16x128xf32>
    %144 = arith.addf %141, %143 : vector<16x128xf32>
    %145 = math.tanh %144 : vector<16x128xf32>
    %cst_25 = arith.constant 1.000000e+00 : f32
    %146 = vector.broadcast %cst_25 : f32 to vector<16x128xf32>
    %147 = arith.subf %146, %140 : vector<16x128xf32>
    %148 = arith.mulf %147, %145 : vector<16x128xf32>
    %149 = arith.mulf %140, %115 : vector<16x128xf32>
    %150 = arith.addf %148, %149 : vector<16x128xf32>
    %151 = vector.extract_strided_slice %2 {offsets = [0, 4], sizes = [16, 1], strides = [1, 1]} : vector<16x8xf32> to vector<16x1xf32>
    %152 = vector.broadcast %151 : vector<16x1xf32> to vector<16x384xf32>
    %153 = vector.broadcast %4 : vector<1x384xf32> to vector<16x384xf32>
    %154 = arith.mulf %152, %153 : vector<16x384xf32>
    %155 = vector.broadcast %5 : vector<1x384xf32> to vector<16x384xf32>
    %156 = arith.addf %154, %155 : vector<16x384xf32>
    %cst_26 = arith.constant dense<0.000000e+00> : vector<16x384xf32>
    %157 = tpu.matmul %150, %8, %cst_26 {dimension_numbers = #tpu.dot_dimension_numbers<[1], [0], [0], [1], [0, 0, 1, 1], [], []>} : vector<16x128xf32>, vector<128x384xf32>, vector<16x384xf32> -> vector<16x384xf32>
    %158 = vector.broadcast %6 : vector<1x384xf32> to vector<16x384xf32>
    %159 = arith.addf %157, %158 : vector<16x384xf32>
    %160 = vector.extract_strided_slice %156 {offsets = [0, 0], sizes = [16, 128], strides = [1, 1]} : vector<16x384xf32> to vector<16x128xf32>
    %161 = vector.extract_strided_slice %159 {offsets = [0, 0], sizes = [16, 128], strides = [1, 1]} : vector<16x384xf32> to vector<16x128xf32>
    %162 = arith.addf %160, %161 : vector<16x128xf32>
    %163 = arith.negf %162 : vector<16x128xf32>
    %164 = math.exp %163 : vector<16x128xf32>
    %cst_27 = arith.constant 1.000000e+00 : f32
    %165 = vector.broadcast %cst_27 : f32 to vector<16x128xf32>
    %166 = arith.addf %165, %164 : vector<16x128xf32>
    %167 = arith.divf %165, %166 : vector<16x128xf32>
    %168 = vector.extract_strided_slice %156 {offsets = [0, 128], sizes = [16, 128], strides = [1, 1]} : vector<16x384xf32> to vector<16x128xf32>
    %169 = vector.extract_strided_slice %159 {offsets = [0, 128], sizes = [16, 128], strides = [1, 1]} : vector<16x384xf32> to vector<16x128xf32>
    %170 = arith.addf %168, %169 : vector<16x128xf32>
    %171 = arith.negf %170 : vector<16x128xf32>
    %172 = math.exp %171 : vector<16x128xf32>
    %cst_28 = arith.constant 1.000000e+00 : f32
    %173 = vector.broadcast %cst_28 : f32 to vector<16x128xf32>
    %174 = arith.addf %173, %172 : vector<16x128xf32>
    %175 = arith.divf %173, %174 : vector<16x128xf32>
    %176 = vector.extract_strided_slice %156 {offsets = [0, 256], sizes = [16, 128], strides = [1, 1]} : vector<16x384xf32> to vector<16x128xf32>
    %177 = vector.extract_strided_slice %159 {offsets = [0, 256], sizes = [16, 128], strides = [1, 1]} : vector<16x384xf32> to vector<16x128xf32>
    %178 = arith.mulf %167, %177 : vector<16x128xf32>
    %179 = arith.addf %176, %178 : vector<16x128xf32>
    %180 = math.tanh %179 : vector<16x128xf32>
    %cst_29 = arith.constant 1.000000e+00 : f32
    %181 = vector.broadcast %cst_29 : f32 to vector<16x128xf32>
    %182 = arith.subf %181, %175 : vector<16x128xf32>
    %183 = arith.mulf %182, %180 : vector<16x128xf32>
    %184 = arith.mulf %175, %150 : vector<16x128xf32>
    %185 = arith.addf %183, %184 : vector<16x128xf32>
    %186 = vector.extract_strided_slice %2 {offsets = [0, 5], sizes = [16, 1], strides = [1, 1]} : vector<16x8xf32> to vector<16x1xf32>
    %187 = vector.broadcast %186 : vector<16x1xf32> to vector<16x384xf32>
    %188 = vector.broadcast %4 : vector<1x384xf32> to vector<16x384xf32>
    %189 = arith.mulf %187, %188 : vector<16x384xf32>
    %190 = vector.broadcast %5 : vector<1x384xf32> to vector<16x384xf32>
    %191 = arith.addf %189, %190 : vector<16x384xf32>
    %cst_30 = arith.constant dense<0.000000e+00> : vector<16x384xf32>
    %192 = tpu.matmul %185, %8, %cst_30 {dimension_numbers = #tpu.dot_dimension_numbers<[1], [0], [0], [1], [0, 0, 1, 1], [], []>} : vector<16x128xf32>, vector<128x384xf32>, vector<16x384xf32> -> vector<16x384xf32>
    %193 = vector.broadcast %6 : vector<1x384xf32> to vector<16x384xf32>
    %194 = arith.addf %192, %193 : vector<16x384xf32>
    %195 = vector.extract_strided_slice %191 {offsets = [0, 0], sizes = [16, 128], strides = [1, 1]} : vector<16x384xf32> to vector<16x128xf32>
    %196 = vector.extract_strided_slice %194 {offsets = [0, 0], sizes = [16, 128], strides = [1, 1]} : vector<16x384xf32> to vector<16x128xf32>
    %197 = arith.addf %195, %196 : vector<16x128xf32>
    %198 = arith.negf %197 : vector<16x128xf32>
    %199 = math.exp %198 : vector<16x128xf32>
    %cst_31 = arith.constant 1.000000e+00 : f32
    %200 = vector.broadcast %cst_31 : f32 to vector<16x128xf32>
    %201 = arith.addf %200, %199 : vector<16x128xf32>
    %202 = arith.divf %200, %201 : vector<16x128xf32>
    %203 = vector.extract_strided_slice %191 {offsets = [0, 128], sizes = [16, 128], strides = [1, 1]} : vector<16x384xf32> to vector<16x128xf32>
    %204 = vector.extract_strided_slice %194 {offsets = [0, 128], sizes = [16, 128], strides = [1, 1]} : vector<16x384xf32> to vector<16x128xf32>
    %205 = arith.addf %203, %204 : vector<16x128xf32>
    %206 = arith.negf %205 : vector<16x128xf32>
    %207 = math.exp %206 : vector<16x128xf32>
    %cst_32 = arith.constant 1.000000e+00 : f32
    %208 = vector.broadcast %cst_32 : f32 to vector<16x128xf32>
    %209 = arith.addf %208, %207 : vector<16x128xf32>
    %210 = arith.divf %208, %209 : vector<16x128xf32>
    %211 = vector.extract_strided_slice %191 {offsets = [0, 256], sizes = [16, 128], strides = [1, 1]} : vector<16x384xf32> to vector<16x128xf32>
    %212 = vector.extract_strided_slice %194 {offsets = [0, 256], sizes = [16, 128], strides = [1, 1]} : vector<16x384xf32> to vector<16x128xf32>
    %213 = arith.mulf %202, %212 : vector<16x128xf32>
    %214 = arith.addf %211, %213 : vector<16x128xf32>
    %215 = math.tanh %214 : vector<16x128xf32>
    %cst_33 = arith.constant 1.000000e+00 : f32
    %216 = vector.broadcast %cst_33 : f32 to vector<16x128xf32>
    %217 = arith.subf %216, %210 : vector<16x128xf32>
    %218 = arith.mulf %217, %215 : vector<16x128xf32>
    %219 = arith.mulf %210, %185 : vector<16x128xf32>
    %220 = arith.addf %218, %219 : vector<16x128xf32>
    %221 = vector.extract_strided_slice %2 {offsets = [0, 6], sizes = [16, 1], strides = [1, 1]} : vector<16x8xf32> to vector<16x1xf32>
    %222 = vector.broadcast %221 : vector<16x1xf32> to vector<16x384xf32>
    %223 = vector.broadcast %4 : vector<1x384xf32> to vector<16x384xf32>
    %224 = arith.mulf %222, %223 : vector<16x384xf32>
    %225 = vector.broadcast %5 : vector<1x384xf32> to vector<16x384xf32>
    %226 = arith.addf %224, %225 : vector<16x384xf32>
    %cst_34 = arith.constant dense<0.000000e+00> : vector<16x384xf32>
    %227 = tpu.matmul %220, %8, %cst_34 {dimension_numbers = #tpu.dot_dimension_numbers<[1], [0], [0], [1], [0, 0, 1, 1], [], []>} : vector<16x128xf32>, vector<128x384xf32>, vector<16x384xf32> -> vector<16x384xf32>
    %228 = vector.broadcast %6 : vector<1x384xf32> to vector<16x384xf32>
    %229 = arith.addf %227, %228 : vector<16x384xf32>
    %230 = vector.extract_strided_slice %226 {offsets = [0, 0], sizes = [16, 128], strides = [1, 1]} : vector<16x384xf32> to vector<16x128xf32>
    %231 = vector.extract_strided_slice %229 {offsets = [0, 0], sizes = [16, 128], strides = [1, 1]} : vector<16x384xf32> to vector<16x128xf32>
    %232 = arith.addf %230, %231 : vector<16x128xf32>
    %233 = arith.negf %232 : vector<16x128xf32>
    %234 = math.exp %233 : vector<16x128xf32>
    %cst_35 = arith.constant 1.000000e+00 : f32
    %235 = vector.broadcast %cst_35 : f32 to vector<16x128xf32>
    %236 = arith.addf %235, %234 : vector<16x128xf32>
    %237 = arith.divf %235, %236 : vector<16x128xf32>
    %238 = vector.extract_strided_slice %226 {offsets = [0, 128], sizes = [16, 128], strides = [1, 1]} : vector<16x384xf32> to vector<16x128xf32>
    %239 = vector.extract_strided_slice %229 {offsets = [0, 128], sizes = [16, 128], strides = [1, 1]} : vector<16x384xf32> to vector<16x128xf32>
    %240 = arith.addf %238, %239 : vector<16x128xf32>
    %241 = arith.negf %240 : vector<16x128xf32>
    %242 = math.exp %241 : vector<16x128xf32>
    %cst_36 = arith.constant 1.000000e+00 : f32
    %243 = vector.broadcast %cst_36 : f32 to vector<16x128xf32>
    %244 = arith.addf %243, %242 : vector<16x128xf32>
    %245 = arith.divf %243, %244 : vector<16x128xf32>
    %246 = vector.extract_strided_slice %226 {offsets = [0, 256], sizes = [16, 128], strides = [1, 1]} : vector<16x384xf32> to vector<16x128xf32>
    %247 = vector.extract_strided_slice %229 {offsets = [0, 256], sizes = [16, 128], strides = [1, 1]} : vector<16x384xf32> to vector<16x128xf32>
    %248 = arith.mulf %237, %247 : vector<16x128xf32>
    %249 = arith.addf %246, %248 : vector<16x128xf32>
    %250 = math.tanh %249 : vector<16x128xf32>
    %cst_37 = arith.constant 1.000000e+00 : f32
    %251 = vector.broadcast %cst_37 : f32 to vector<16x128xf32>
    %252 = arith.subf %251, %245 : vector<16x128xf32>
    %253 = arith.mulf %252, %250 : vector<16x128xf32>
    %254 = arith.mulf %245, %220 : vector<16x128xf32>
    %255 = arith.addf %253, %254 : vector<16x128xf32>
    %256 = vector.extract_strided_slice %2 {offsets = [0, 7], sizes = [16, 1], strides = [1, 1]} : vector<16x8xf32> to vector<16x1xf32>
    %257 = vector.broadcast %256 : vector<16x1xf32> to vector<16x384xf32>
    %258 = vector.broadcast %4 : vector<1x384xf32> to vector<16x384xf32>
    %259 = arith.mulf %257, %258 : vector<16x384xf32>
    %260 = vector.broadcast %5 : vector<1x384xf32> to vector<16x384xf32>
    %261 = arith.addf %259, %260 : vector<16x384xf32>
    %cst_38 = arith.constant dense<0.000000e+00> : vector<16x384xf32>
    %262 = tpu.matmul %255, %8, %cst_38 {dimension_numbers = #tpu.dot_dimension_numbers<[1], [0], [0], [1], [0, 0, 1, 1], [], []>} : vector<16x128xf32>, vector<128x384xf32>, vector<16x384xf32> -> vector<16x384xf32>
    %263 = vector.broadcast %6 : vector<1x384xf32> to vector<16x384xf32>
    %264 = arith.addf %262, %263 : vector<16x384xf32>
    %265 = vector.extract_strided_slice %261 {offsets = [0, 0], sizes = [16, 128], strides = [1, 1]} : vector<16x384xf32> to vector<16x128xf32>
    %266 = vector.extract_strided_slice %264 {offsets = [0, 0], sizes = [16, 128], strides = [1, 1]} : vector<16x384xf32> to vector<16x128xf32>
    %267 = arith.addf %265, %266 : vector<16x128xf32>
    %268 = arith.negf %267 : vector<16x128xf32>
    %269 = math.exp %268 : vector<16x128xf32>
    %cst_39 = arith.constant 1.000000e+00 : f32
    %270 = vector.broadcast %cst_39 : f32 to vector<16x128xf32>
    %271 = arith.addf %270, %269 : vector<16x128xf32>
    %272 = arith.divf %270, %271 : vector<16x128xf32>
    %273 = vector.extract_strided_slice %261 {offsets = [0, 128], sizes = [16, 128], strides = [1, 1]} : vector<16x384xf32> to vector<16x128xf32>
    %274 = vector.extract_strided_slice %264 {offsets = [0, 128], sizes = [16, 128], strides = [1, 1]} : vector<16x384xf32> to vector<16x128xf32>
    %275 = arith.addf %273, %274 : vector<16x128xf32>
    %276 = arith.negf %275 : vector<16x128xf32>
    %277 = math.exp %276 : vector<16x128xf32>
    %cst_40 = arith.constant 1.000000e+00 : f32
    %278 = vector.broadcast %cst_40 : f32 to vector<16x128xf32>
    %279 = arith.addf %278, %277 : vector<16x128xf32>
    %280 = arith.divf %278, %279 : vector<16x128xf32>
    %281 = vector.extract_strided_slice %261 {offsets = [0, 256], sizes = [16, 128], strides = [1, 1]} : vector<16x384xf32> to vector<16x128xf32>
    %282 = vector.extract_strided_slice %264 {offsets = [0, 256], sizes = [16, 128], strides = [1, 1]} : vector<16x384xf32> to vector<16x128xf32>
    %283 = arith.mulf %272, %282 : vector<16x128xf32>
    %284 = arith.addf %281, %283 : vector<16x128xf32>
    %285 = math.tanh %284 : vector<16x128xf32>
    %cst_41 = arith.constant 1.000000e+00 : f32
    %286 = vector.broadcast %cst_41 : f32 to vector<16x128xf32>
    %287 = arith.subf %286, %280 : vector<16x128xf32>
    %288 = arith.mulf %287, %285 : vector<16x128xf32>
    %289 = arith.mulf %280, %255 : vector<16x128xf32>
    %290 = arith.addf %288, %289 : vector<16x128xf32>
    %cst_42 = arith.constant dense<0.000000e+00> : vector<16x128xf32>
    %291 = tpu.matmul %290, %9, %cst_42 {dimension_numbers = #tpu.dot_dimension_numbers<[1], [0], [0], [1], [0, 0, 1, 1], [], []>} : vector<16x128xf32>, vector<128x128xf32>, vector<16x128xf32> -> vector<16x128xf32>
    %292 = vector.broadcast %7 : vector<1x128xf32> to vector<16x128xf32>
    %293 = arith.addf %291, %292 : vector<16x128xf32>
    %c0_43 = arith.constant 0 : index
    %c0_44 = arith.constant 0 : index
    %294 = vector.load %arg6[%c0_43, %c0_44] : memref<16x128xf32, #tpu.memory_space<vmem>>, vector<16x128xf32>
    tpu.vector_store %arg6[%c0_43, %c0_44], %293 {strides = array<i32>} : memref<16x128xf32, #tpu.memory_space<vmem>>, vector<16x128xf32>,
    return
  }
  func.func @transform_0(%arg0: i32) -> (i32, i32) {
    %c0_i32 = arith.constant 0 : i32
    %c0_i32_0 = arith.constant 0 : i32
    return %arg0, %c0_i32 : i32, i32
  }
  func.func @transform_1(%arg0: i32) -> (i32, i32) {
    %c0_i32 = arith.constant 0 : i32
    %c0_i32_0 = arith.constant 0 : i32
    %c0_i32_1 = arith.constant 0 : i32
    return %c0_i32, %c0_i32_0 : i32, i32
  }
  func.func @transform_2(%arg0: i32) -> (i32, i32) {
    %c0_i32 = arith.constant 0 : i32
    %c0_i32_0 = arith.constant 0 : i32
    %c0_i32_1 = arith.constant 0 : i32
    return %c0_i32, %c0_i32_0 : i32, i32
  }
  func.func @transform_3(%arg0: i32) -> (i32, i32) {
    %c0_i32 = arith.constant 0 : i32
    %c0_i32_0 = arith.constant 0 : i32
    %c0_i32_1 = arith.constant 0 : i32
    return %c0_i32, %c0_i32_0 : i32, i32
  }
  func.func @transform_4(%arg0: i32) -> (i32, i32) {
    %c0_i32 = arith.constant 0 : i32
    %c0_i32_0 = arith.constant 0 : i32
    %c0_i32_1 = arith.constant 0 : i32
    return %c0_i32, %c0_i32_0 : i32, i32
  }
  func.func @transform_5(%arg0: i32) -> (i32, i32) {
    %c0_i32 = arith.constant 0 : i32
    %c0_i32_0 = arith.constant 0 : i32
    return %arg0, %c0_i32 : i32, i32
  }
}

</mosaic_0001>

<bundles_post_ra>
// kernel: tpu_custom_call.1
= control target key start
LH: loop header
LB: loop body
LE: loop exit
PB: predicated region body
PF: predicated region fallthrough
CT: control target
= control target key end

     0   :  { %10 = vsyncpa [#allocation3], 0  ;;  %s3225_s0 = inlined_call_operand.hbm [shape: bf16[16,16], index: 0, kind: input, shape index: {}]   ;;  %s3226_s1 = inlined_call_operand.vmem [shape: bf16[16,8], index: 1, kind: input, shape index: {}]   ;;  %s3227_s2 = inlined_call_operand.vmem [shape: f32[4,384], index: 2, kind: input, shape index: {}]   ;;  %s3228_s3 = inlined_call_operand.hbm [shape: f32[128,384], index: 3, kind: input, shape index: {}]   ;;  %s3229_s4 = inlined_call_operand.hbm [shape: f32[128,128], index: 4, kind: input, shape index: {}]   ;;  %s3230_s5 = inlined_call_operand.hbm [shape: f32[16,128], index: 5, kind: output, shape index: {}]  }
   0x1   :  { %11 = vsyncpa [#allocation6], 0  ;;  %s34_s20 = sshll.u32 %s3228_s3, 4  ;;  %s35_s20 = int_to_ptr.hbm [resolvable:$true] %s34_s20 }
   0x2   :  { %12 = vsyncpa [#allocation4], 0  ;;  %s2120_s21 = smov [#allocation5]   ;;  %s17_s25 = sshll.u32 %s3225_s0, 4  ;;  %s18_s25 = int_to_ptr.hbm [resolvable:$true] %s17_s25 }
   0x3   :  { %s36_s22 = sshll.u32 %s2120_s21, 4  ;;  %s2121_s26 = smov 384   ;;  %s37_s22 = int_to_ptr.vmem [resolvable:$true] %s36_s22 }
   0x4   :  { %s2122_s27 = smov 24   ;;  %s2123_s28 = smov [#allocation2]  }
   0x5   :  { %42 = dma.hbm_to_vmem [thread:$0]  %s35_s20, 6144, %s37_s22, [#allocation6], %s2121_s26, %s2121_s26, %s2122_s27  }
   0x6   :  { %s19_s29 = sshll.u32 %s2123_s28, 4  ;;  %s2124_s30 = smov 64   ;;  %s20_s29 = int_to_ptr.vmem [resolvable:$true] %s19_s29 }
   0x7   :  { %s2125_s6 = smov 4   ;;  %s47_s8 = sshll.u32 %s3229_s4, 4  ;;  %s48_s8 = int_to_ptr.hbm [resolvable:$true] %s47_s8 }
   0x8   :  { %25 = dma.hbm_to_vmem [thread:$0]  %s18_s25, 128, %s20_s29, [#allocation3], %s2124_s30, %s2124_s30, %s2125_s6  }
   0x9   :  { %s2126_s9 = smov [#allocation7]   ;;  %s2127_s11 = smov 128  }
   0xa   :  { %s49_s10 = sshll.u32 %s2126_s9, 4  ;;  %s2128_s0 = smov 8   ;;  %s50_s10 = int_to_ptr.vmem [resolvable:$true] %s49_s10 }
   0xb   :  { %55 = dma.hbm_to_vmem [thread:$0]  %s48_s8, 2048, %s50_s10, [#allocation6], %s2127_s11, %s2127_s11, %s2128_s0  }
   0xc   :  { %2114 = dma.done.wait [#allocation3], 128  }
   0xd   :  { %2115 = vsyncadd [#allocation3], 4294967168 }
   0xe   :  { %2116 = dma.done.wait [#allocation6], 8192  }
   0xf   :  { %2117 = vsyncadd [#allocation6], 4294959104  ;;  %v1751_v0 = vld [vmem:[%s3226_s1] sm:$0xff]  ;;  %v2184_v1 = vld [vmem:[#allocation5 + $0x170] sm:$0xff]  ;;  %vm84_vm0 = vcmask 130048   ;;  %v2129_v14 = vmov 2  }
  0x10   :  { %v1750_v2 = vld [vmem:[#allocation2] sm:$0xff]  ;;  %242 = vmatpush.msra.mxu2 %v2184_v1  ;;  %v2189_v4 = vld [vmem:[#allocation5 + $0x168] sm:$0xff]  ;;  %95 = vmatpush.bf16.msra.mxu0 %v1751_v0  ;;  %v2191_v5 = vld [vmem:[#allocation5 + $0x140] sm:$0xff]  ;;  %v2130_v17 = vmov 1   ;;  %v2131_v22 = vmov 0   ;;  %v2132_v45 = vmov 0.0  }
  0x11   :  { %v2187_v3 = vld [vmem:[#allocation5 + $0x158] sm:$0xff]  ;;  %219 = vmatpush.msra.mxu1 %v2189_v4  ;;  %v2194_v6 = vld [vmem:[#allocation5 + $0x150] sm:$0xff]  ;;  %v2200_v8 = vld [vmem:[#allocation5 + $0x128] sm:$0xff]  ;;  %1789 = vset.pattern.permute.xlu2 %v2129_v14  ;;  %v2133_v56 = vmov 4   ;;  %v2134_v57 = vmov 3   ;;  %v2135_v58 = vmov 5  }
  0x12   :  { %243 = vmatpush.msra.mxu2 %v2187_v3  ;;  %v2197_v7 = vld [vmem:[#allocation5 + $0x138] sm:$0xff]  ;;  %v2204_v9 = vld [vmem:[#allocation5 + $0x120] sm:$0xff]  ;;  %v2206_v10 = vld [vmem:[#allocation5 + $0x110] sm:$0xff]  ;;  %1788 = vset.pattern.permute.xlu1 %v2130_v17  ;;  %v2136_v59 = vmov 6   ;;  %v2137_v60 = vmov 7   ;;  %s2138_s18 = smov [#allocation8]  }
  0x13   :  { %220 = vmatpush.msra.mxu1 %v2194_v6  ;;  %1717 = vmatmul.msk.bf16.vlgmr.msra.gmra.mxu0 %vm84_vm0, %v1750_v2  ;;  %v2211_v11 = vld [vmem:[#allocation5 + $0x108] sm:$0xff]  ;;  %v2213_v12 = vld [vmem:[#allocation5 + $0xf8] sm:$0xff]  ;;  %v2218_v13 = vld [vmem:[#allocation5 + $0xf0] sm:$0xff]  ;;  %s1693_s19 = sshll.u32 %s2138_s18, 4  ;;  %s1695_s22 = sshll.u32 %s3230_s5, 4  ;;  %s1694_s19 = int_to_ptr.vmem [resolvable:$true] %s1693_s19  ;;  %s1696_s22 = int_to_ptr.hbm [resolvable:$true] %s1695_s22 }
  0x14   :  { %402 = vmatpush.msrb.mxu0 %v2189_v4  ;;  %244 = vmatpush.msra.mxu2 %v2191_v5  ;;  %v2220_v15 = vld [vmem:[#allocation5 + $0xe0] sm:$0xff]  ;;  %v2223_v16 = vld [vmem:[#allocation5 + $0x178] sm:$0xff]  ;;  %v2231_v20 = vld [vmem:[#allocation5 + $0xc8] sm:$0xff] }
  0x15   :  { %221 = vmatpush.msra.mxu1 %v2197_v7  ;;  %v2226_v18 = vld [vmem:[#allocation5 + $0xd8] sm:$0xff]  ;;  %265 = vmatpush.msra.mxu3 %v2223_v16  ;;  %v2229_v19 = vld [vmem:[#allocation5 + $0x160] sm:$0xff]  ;;  %v2234_v21 = vld [vmem:[#allocation5 + $0x148] sm:$0xff] }
  0x16   :  { %403 = vmatpush.msrb.mxu0 %v2194_v6  ;;  %245 = vmatpush.msra.mxu2 %v2200_v8  ;;  %v2237_v23 = vld [vmem:[#allocation5 + $0xc0] sm:$0xff]  ;;  %v2240_v24 = vld [vmem:[#allocation5 + $0xb0] sm:$0xff]  ;;  %v2247_v26 = vld [vmem:[#allocation5 + $0xa8] sm:$0xff] }
  0x17   :  { %222 = vmatpush.msra.mxu1 %v2204_v9  ;;  %1787 = vset.pattern.permute.xlu0 %v2131_v22  ;;  %v2243_v25 = vld [vmem:[#allocation5 + $0x130] sm:$0xff]  ;;  %v2250_v27 = vld [vmem:[#allocation5 + $0x98] sm:$0xff]  ;;  %v2260_v30 = vld [vmem:[#allocation5 + $0x80] sm:$0xff] }
  0x18   :  { %404 = vmatpush.msrb.mxu0 %v2197_v7  ;;  %246 = vmatpush.msra.mxu2 %v2206_v10  ;;  %v2253_v28 = vld [vmem:[#allocation5 + $0x118] sm:$0xff]  ;;  %v2257_v29 = vld [vmem:[#allocation5 + $0x90] sm:$0xff]  ;;  %v2263_v31 = vld [vmem:[#allocation5 + $0x100] sm:$0xff] }
  0x19   :  { %223 = vmatpush.msra.mxu1 %v2211_v11  ;;  %266 = vmatpush.msra.mxu3 %v2229_v19  ;;  %v2267_v32 = vld [vmem:[#allocation5 + $0x78] sm:$0xff]  ;;  %v2270_v33 = vld [vmem:[#allocation5 + $0x68] sm:$0xff]  ;;  %v2277_v35 = vld [vmem:[#allocation5 + $0x60] sm:$0xff] }
  0x1a   :  { %247 = vmatpush.msra.mxu2 %v2213_v12  ;;  %405 = vmatpush.msrb.mxu0 %v2204_v9  ;;  %3302 = vst [vmem:[#allocation12_spill] sm:$0xff] %v2270_v33  ;;  %v2273_v34 = vld [vmem:[#allocation5 + $0xe8] sm:$0xff]  ;;  %v2280_v36 = vld [vmem:[#allocation5 + $0x50] sm:$0xff]  ;;  %v2290_v39 = vld [vmem:[#allocation5 + $0x38] sm:$0xff] }
  0x1b   :  { %224 = vmatpush.msra.mxu1 %v2218_v13  ;;  %267 = vmatpush.msra.mxu3 %v2234_v21  ;;  %3303 = vst [vmem:[#allocation13_spill] sm:$0xff] %v2277_v35  ;;  %v2283_v37 = vld [vmem:[#allocation5 + $0xd0] sm:$0xff]  ;;  %v2287_v38 = vld [vmem:[#allocation5 + $0x48] sm:$0xff]  ;;  %v2298_v41 = vld [vmem:[#allocation5 + $0x20] sm:$0xff] }
  0x1c   :  { %248 = vmatpush.msra.mxu2 %v2220_v15  ;;  %406 = vmatpush.msrb.mxu0 %v2211_v11  ;;  %3304 = vst [vmem:[#allocation14_spill] sm:$0xff] %v2280_v36  ;;  %v2295_v40 = vld [vmem:[#allocation5 + $0x30] sm:$0xff]  ;;  %v2303_v42 = vld [vmem:[#allocation5 + $0x18] sm:$0xff]  ;;  %v2305_v43 = vld [vmem:[#allocation5 + $0x8] sm:$0xff] }
  0x1d   :  { %225 = vmatpush.msra.mxu1 %v2226_v18  ;;  %268 = vmatpush.msra.mxu3 %v2243_v25  ;;  %3305 = vst [vmem:[#allocation15_spill] sm:$0xff] %v2287_v38  ;;  %v2310_v44 = vld [vmem:[#allocation5] sm:$0xff]  ;;  %v2372_v46 = vld [vmem:[#allocation5 + $0xb8] sm:$0xff]  ;;  %v2378_v48 = vld [vmem:[#allocation5 + $0x88] sm:$0xff] }
  0x1e   :  { %249 = vmatpush.msra.mxu2 %v2231_v20  ;;  %407 = vmatpush.msrb.mxu0 %v2218_v13  ;;  %3306 = vst [vmem:[#allocation16_spill] sm:$0xff] %v2290_v39  ;;  %v2376_v47 = vld [vmem:[#allocation5 + $0xa0] sm:$0xff]  ;;  %v2383_v49 = vld [vmem:[#allocation5 + $0x70] sm:$0xff]  ;;  %v2391_v50 = vld [vmem:[#allocation5 + $0x58] sm:$0xff] }
  0x1f   :  { %226 = vmatpush.msra.mxu1 %v2237_v23  ;;  %269 = vmatpush.msra.mxu3 %v2253_v28  ;;  %3307 = vst [vmem:[#allocation17_spill] sm:$0xff] %v2295_v40  ;;  %v2396_v51 = vld [vmem:[#allocation5 + $0x40] sm:$0xff]  ;;  %v2398_v52 = vld [vmem:[#allocation5 + $0x28] sm:$0xff]  ;;  %v2403_v53 = vld [vmem:[#allocation5 + $0x10] sm:$0xff] }
  0x20   :  { %250 = vmatpush.msra.mxu2 %v2240_v24  ;;  %408 = vmatpush.msrb.mxu0 %v2226_v18  ;;  %3308 = vst [vmem:[#allocation18_spill] sm:$0xff] %v2298_v41  ;;  %v102_v61 = vld [vmem:[%s3227_s2] sm:$0xff] }
  0x21   :  { %227 = vmatpush.msra.mxu1 %v2247_v26  ;;  %270 = vmatpush.msra.mxu3 %v2263_v31  ;;  %3309 = vst [vmem:[#allocation19_spill] sm:$0xff] %v2303_v42  ;;  %v210_v62 = vperm.slane %v102_v61, 2  ;;  %v211_v63 = vperm.slane %v102_v61, 6  ;;  %v180_v0 = vperm.slane %v102_v61, 0  ;;  %v181_v2 = vperm.slane %v102_v61, 4 }
  0x22   :  { %251 = vmatpush.msra.mxu2 %v2250_v27  ;;  %409 = vmatpush.msrb.mxu0 %v2237_v23  ;;  %3310 = vst [vmem:[#allocation20_spill] sm:$0xff] %v2305_v43  ;;  %v195_v17 = vperm.slane %v102_v61, 1  ;;  %v196_v22 = vperm.slane %v102_v61, 5 }
  0x23   :  { %228 = vmatpush.msra.mxu1 %v2257_v29  ;;  %271 = vmatpush.msra.mxu3 %v2273_v34  ;;  %3311 = vst [vmem:[#allocation21_spill] sm:$0xff] %v2310_v44 }
  0x24   :  { %252 = vmatpush.msra.mxu2 %v2260_v30  ;;  %410 = vmatpush.msrb.mxu0 %v2247_v26  ;;  %3312 = vst [vmem:[#allocation22_spill] sm:$0xff] %v2391_v50 }
  0x25   :  { %229 = vmatpush.msra.mxu1 %v2267_v32  ;;  %272 = vmatpush.msra.mxu3 %v2283_v37  ;;  %3313 = vst [vmem:[#allocation23_spill] sm:$0xff] %v2396_v51 }
  0x26   :  { %253 = vmatpush.msra.mxu2 %v2270_v33  ;;  %411 = vmatpush.msrb.mxu0 %v2257_v29  ;;  %3314 = vst [vmem:[#allocation24_spill] sm:$0xff] %v2398_v52 }
  0x27   :  { %230 = vmatpush.msra.mxu1 %v2277_v35  ;;  %273 = vmatpush.msra.mxu3 %v2372_v46  ;;  %3315 = vst [vmem:[#allocation25_spill] sm:$0xff] %v2403_v53 }
  0x28   :  { %254 = vmatpush.msra.mxu2 %v2280_v36  ;;  %412 = vmatpush.msrb.mxu0 %v2267_v32 }
  0x29   :  { %231 = vmatpush.msra.mxu1 %v2287_v38  ;;  %274 = vmatpush.msra.mxu3 %v2376_v47 }
  0x2a   :  { %255 = vmatpush.msra.mxu2 %v2290_v39  ;;  %413 = vmatpush.msrb.mxu0 %v2277_v35 }
  0x2b   :  { %232 = vmatpush.msra.mxu1 %v2295_v40  ;;  %275 = vmatpush.msra.mxu3 %v2378_v48 }
  0x2c   :  { %256 = vmatpush.msra.mxu2 %v2298_v41  ;;  %414 = vmatpush.msrb.mxu0 %v2287_v38 }
  0x2d   :  { %233 = vmatpush.msra.mxu1 %v2303_v42  ;;  %276 = vmatpush.msra.mxu3 %v2383_v49 }
  0x2e   :  { %257 = vmatpush.msra.mxu2 %v2305_v43  ;;  %415 = vmatpush.msrb.mxu0 %v2295_v40 }
  0x2f   :  { %258 = vmatmul.f32.vlgmr.msra.gmra.mxu2 %v2132_v45  ;;  %234 = vmatpush.msra.mxu1 %v2310_v44 }
  0x30   :  { %235 = vmatmul.f32.vlgmr.msra.gmra.mxu1 %v2132_v45  ;;  %448 = vmatpush.msrb.mxu2 %v2223_v16 }
  0x31   :  { %425 = vmatpush.msrb.mxu1 %v2184_v1  ;;  %416 = vmatpush.msrb.mxu0 %v2303_v42 }
  0x32   :  { %449 = vmatpush.msrb.mxu2 %v2229_v19  ;;  %277 = vmatpush.msra.mxu3 %v2391_v50 }
  0x33   :  { %426 = vmatpush.msrb.mxu1 %v2187_v3  ;;  %417 = vmatpush.msrb.mxu0 %v2310_v44 }
  0x34   :  { %450 = vmatpush.msrb.mxu2 %v2234_v21  ;;  %278 = vmatpush.msra.mxu3 %v2396_v51 }
  0x35   :  { %427 = vmatpush.msrb.mxu1 %v2191_v5  ;;  %608 = vmatpush.msra.mxu0 %v2184_v1 }
  0x36   :  { %451 = vmatpush.msrb.mxu2 %v2243_v25  ;;  %279 = vmatpush.msra.mxu3 %v2398_v52 }
  0x37   :  { %261 = vmatmul.f32.gmra.mxu2 %v2132_v45  ;;  %428 = vmatpush.msrb.mxu1 %v2200_v8 }
  0x38   :  { %238 = vmatmul.f32.gmra.mxu1 %v2132_v45  ;;  %452 = vmatpush.msrb.mxu2 %v2253_v28 }
  0x39   :  { %429 = vmatpush.msrb.mxu1 %v2206_v10  ;;  %609 = vmatpush.msra.mxu0 %v2187_v3 }
  0x3a   :  { %453 = vmatpush.msrb.mxu2 %v2263_v31  ;;  %280 = vmatpush.msra.mxu3 %v2403_v53 }
  0x3b   :  { %430 = vmatpush.msrb.mxu1 %v2213_v12  ;;  %610 = vmatpush.msra.mxu0 %v2191_v5 }
  0x3c   :  { %454 = vmatpush.msrb.mxu2 %v2273_v34  ;;  %281 = vmatmul.f32.vlgmr.msra.gmra.mxu3 %v2132_v45 }
  0x3d   :  { %431 = vmatpush.msrb.mxu1 %v2220_v15  ;;  %611 = vmatpush.msra.mxu0 %v2200_v8 }
  0x3e   :  { %455 = vmatpush.msrb.mxu2 %v2283_v37  ;;  %585 = vmatpush.msrb.mxu3 %v2189_v4 }
  0x3f   :  { %432 = vmatpush.msrb.mxu1 %v2231_v20  ;;  %612 = vmatpush.msra.mxu0 %v2206_v10 }
  0x40   :  { %456 = vmatpush.msrb.mxu2 %v2372_v46  ;;  %586 = vmatpush.msrb.mxu3 %v2194_v6 }
  0x41   :  { %433 = vmatpush.msrb.mxu1 %v2240_v24  ;;  %613 = vmatpush.msra.mxu0 %v2213_v12 }
  0x42   :  { %457 = vmatpush.msrb.mxu2 %v2376_v47  ;;  %587 = vmatpush.msrb.mxu3 %v2197_v7 }
  0x43   :  { %434 = vmatpush.msrb.mxu1 %v2250_v27  ;;  %614 = vmatpush.msra.mxu0 %v2220_v15 }
  0x44   :  { %458 = vmatpush.msrb.mxu2 %v2378_v48  ;;  %588 = vmatpush.msrb.mxu3 %v2204_v9 }
  0x45   :  { %435 = vmatpush.msrb.mxu1 %v2260_v30  ;;  %615 = vmatpush.msra.mxu0 %v2231_v20 }
  0x46   :  { %459 = vmatpush.msrb.mxu2 %v2383_v49  ;;  %284 = vmatmul.f32.gmra.mxu3 %v2132_v45 }
  0x47   :  { %436 = vmatpush.msrb.mxu1 %v2270_v33  ;;  %616 = vmatpush.msra.mxu0 %v2240_v24 }
  0x48   :  { %460 = vmatpush.msrb.mxu2 %v2391_v50  ;;  %589 = vmatpush.msrb.mxu3 %v2211_v11 }
  0x49   :  { %437 = vmatpush.msrb.mxu1 %v2280_v36  ;;  %617 = vmatpush.msra.mxu0 %v2250_v27 }
  0x4a   :  { %461 = vmatpush.msrb.mxu2 %v2396_v51  ;;  %590 = vmatpush.msrb.mxu3 %v2218_v13 }
  0x4b   :  { %438 = vmatpush.msrb.mxu1 %v2290_v39  ;;  %618 = vmatpush.msra.mxu0 %v2260_v30 }
  0x4c   :  { %462 = vmatpush.msrb.mxu2 %v2398_v52  ;;  %591 = vmatpush.msrb.mxu3 %v2226_v18 }
  0x4d   :  { %439 = vmatpush.msrb.mxu1 %v2298_v41  ;;  %619 = vmatpush.msra.mxu0 %v2270_v33 }
  0x4e   :  { %463 = vmatpush.msrb.mxu2 %v2403_v53  ;;  %592 = vmatpush.msrb.mxu3 %v2237_v23 }
  0x4f   :  { %440 = vmatpush.msrb.mxu1 %v2305_v43  ;;  %620 = vmatpush.msra.mxu0 %v2280_v36 }
  0x50   :  { %768 = vmatpush.msra.mxu2 %v2189_v4  ;;  %593 = vmatpush.msrb.mxu3 %v2247_v26 }
  0x51   :  { %631 = vmatpush.msra.mxu1 %v2223_v16  ;;  %621 = vmatpush.msra.mxu0 %v2290_v39 }
  0x52   :  { %769 = vmatpush.msra.mxu2 %v2194_v6  ;;  %594 = vmatpush.msrb.mxu3 %v2257_v29 }
  0x53   :  { %632 = vmatpush.msra.mxu1 %v2229_v19  ;;  %622 = vmatpush.msra.mxu0 %v2298_v41 }
  0x54   :  { %770 = vmatpush.msra.mxu2 %v2197_v7  ;;  %595 = vmatpush.msrb.mxu3 %v2267_v32 }
  0x55   :  { %633 = vmatpush.msra.mxu1 %v2234_v21  ;;  %623 = vmatpush.msra.mxu0 %v2305_v43 }
  0x56   :  { %771 = vmatpush.msra.mxu2 %v2204_v9  ;;  %596 = vmatpush.msrb.mxu3 %v2277_v35 }
  0x57   :  { %634 = vmatpush.msra.mxu1 %v2243_v25 }
  0x58   :  { %772 = vmatpush.msra.mxu2 %v2211_v11  ;;  %597 = vmatpush.msrb.mxu3 %v2287_v38 }
  0x59   :  { %635 = vmatpush.msra.mxu1 %v2253_v28 }
  0x5a   :  { %773 = vmatpush.msra.mxu2 %v2218_v13  ;;  %598 = vmatpush.msrb.mxu3 %v2295_v40 }
  0x5b   :  { %636 = vmatpush.msra.mxu1 %v2263_v31 }
  0x5c   :  { %774 = vmatpush.msra.mxu2 %v2226_v18  ;;  %599 = vmatpush.msrb.mxu3 %v2303_v42 }
  0x5d   :  { %637 = vmatpush.msra.mxu1 %v2273_v34 }
  0x5e   :  { %775 = vmatpush.msra.mxu2 %v2237_v23  ;;  %600 = vmatpush.msrb.mxu3 %v2310_v44 }
  0x5f   :  { %638 = vmatpush.msra.mxu1 %v2283_v37 }
  0x60   :  { %776 = vmatpush.msra.mxu2 %v2247_v26  ;;  %791 = vmatpush.msra.mxu3 %v2184_v1 }
  0x61   :  { %639 = vmatpush.msra.mxu1 %v2372_v46 }
  0x62   :  { %777 = vmatpush.msra.mxu2 %v2257_v29  ;;  %792 = vmatpush.msra.mxu3 %v2187_v3 }
  0x63   :  { %640 = vmatpush.msra.mxu1 %v2376_v47 }
  0x64   :  { %778 = vmatpush.msra.mxu2 %v2267_v32  ;;  %793 = vmatpush.msra.mxu3 %v2191_v5 }
  0x65   :  { %641 = vmatpush.msra.mxu1 %v2378_v48 }
  0x66   :  { %779 = vmatpush.msra.mxu2 %v2277_v35  ;;  %794 = vmatpush.msra.mxu3 %v2200_v8 }
  0x67   :  { %642 = vmatpush.msra.mxu1 %v2383_v49 }
  0x68   :  { %780 = vmatpush.msra.mxu2 %v2287_v38  ;;  %795 = vmatpush.msra.mxu3 %v2206_v10 }
  0x69   :  { %643 = vmatpush.msra.mxu1 %v2391_v50 }
  0x6a   :  { %781 = vmatpush.msra.mxu2 %v2295_v40  ;;  %796 = vmatpush.msra.mxu3 %v2213_v12 }
  0x6b   :  { %644 = vmatpush.msra.mxu1 %v2396_v51 }
  0x6c   :  { %782 = vmatpush.msra.mxu2 %v2303_v42  ;;  %797 = vmatpush.msra.mxu3 %v2220_v15 }
  0x6d   :  { %645 = vmatpush.msra.mxu1 %v2398_v52 }
  0x6e   :  { %783 = vmatpush.msra.mxu2 %v2310_v44  ;;  %798 = vmatpush.msra.mxu3 %v2231_v20 }
  0x6f   :  { %646 = vmatpush.msra.mxu1 %v2403_v53 }
  0x70   :  { %799 = vmatpush.msra.mxu3 %v2240_v24 }
  0x72   :  { %800 = vmatpush.msra.mxu3 %v2250_v27 }
  0x74   :  { %801 = vmatpush.msra.mxu3 %v2260_v30 }
  0x76   :  { %802 = vmatpush.msra.mxu3 %v2270_v33 }
  0x78   :  { %803 = vmatpush.msra.mxu3 %v2280_v36 }
  0x7a   :  { %804 = vmatpush.msra.mxu3 %v2290_v39 }
  0x7c   :  { %805 = vmatpush.msra.mxu3 %v2298_v41 }
  0x7e   :  { %806 = vmatpush.msra.mxu3 %v2305_v43 }
  0x90   :  { %v97_v54 = vpop.f32.mrf.mxu0 }
  0x91   :  { %566 = vperm.xlu2 %1789, %v97_v54   ;;  %383 = vperm.xlu1 %1788, %v97_v54  }
  0x92   :  { %170 = vperm.xlu0 %1787, %v97_v54  }
  0x98   :  { %v99_v55 = vpop.f32.mrf.mxu0 }
  0x99   :  { %570 = vperm.xlu2 %1789, %v99_v55   ;;  %387 = vperm.xlu1 %1788, %v99_v55  }
  0x9a   :  { %175 = vperm.xlu0 %1787, %v99_v55  }
  0xa1   :  { %1792 = vset.pattern.permute.xlu2 %v2133_v56  ;;  %1791 = vset.pattern.permute.xlu1 %v2134_v57 }
  0xa2   :  { %1790 = vset.pattern.permute.xlu0 %v2134_v57  ;;  %932 = vperm.xlu2 %1792, %v97_v54   ;;  %v2471_v57 = vperm.slane %v181_v2, 0 }
  0xa3   :  { %753 = vperm.xlu1 %1791, %v99_v55   ;;  %749 = vperm.xlu0 %1790, %v97_v54  }
  0xa4   :  { %3319 = vst [vmem:[#allocation29_spill] sm:$0xff] %v2471_v57 }
  0xaa   :  { %1794 = vset.pattern.permute.xlu2 %v2135_v58 }
  0xab   :  { %1793 = vset.pattern.permute.xlu1 %v2133_v56  ;;  %1795 = vset.pattern.permute.xlu0 %v2135_v58  ;;  %v2469_v56 = vperm.slane %v180_v0, 0 }
  0xac   :  { %1115 = vperm.xlu2 %1794, %v97_v54   ;;  %936 = vperm.xlu1 %1793, %v99_v55  }
  0xad   :  { %1119 = vperm.xlu0 %1795, %v99_v55   ;;  %v236_v14 = vpop.f32.mrf.mxu1  ;;  %3318 = vst [vmem:[#allocation28_spill] sm:$0xff] %v2469_v56 }
  0xb2   :  { %v259_v45 = vpop.f32.mrf.mxu2 }
  0xb4   :  { %1797 = vset.pattern.permute.xlu2 %v2136_v59  ;;  %1796 = vset.pattern.permute.xlu1 %v2136_v59  ;;  %v2473_v59 = vperm.slane %v195_v17, 1 }
  0xb5   :  { %1302 = vperm.xlu2 %1797, %v99_v55   ;;  %1298 = vperm.xlu1 %1796, %v97_v54   ;;  %v239_v42 = vpop.f32.mrf.mxu1 }
  0xb6   :  { %1800 = vset.pattern.permute.xlu0 %v2137_v60  ;;  %3320 = vst [vmem:[#allocation30_spill] sm:$0xff] %v2473_v59 }
  0xba   :  { %v262_v53 = vpop.f32.mrf.mxu2 }
  0xbd   :  { %1799 = vset.pattern.permute.xlu2 %v2137_v60  ;;  %1798 = vset.pattern.permute.xlu1 %v2137_v60  ;;  %v2475_v60 = vperm.slane %v196_v22, 1 }
  0xbe   :  { %1481 = vperm.xlu2 %1799, %v97_v54   ;;  %1485 = vperm.xlu1 %1798, %v99_v55   ;;  %v2465_v54 = vperm.slane %v210_v62, 2  ;;  %v2467_v55 = vperm.slane %v211_v63, 2 }
  0xbf   :  { %3321 = vst [vmem:[#allocation31_spill] sm:$0xff] %v2475_v60 }
  0xc0   :  { %3316 = vst [vmem:[#allocation26_spill] sm:$0xff] %v2465_v54  ;;  %v237_v61 = vadd.f32 %v236_v14, %v2465_v54  ;;  %v260_v62 = vadd.f32 %v259_v45, %v2467_v55  ;;  %v240_v40 = vadd.f32 %v239_v42, %v2465_v54 }
  0xc1   :  { %3317 = vst [vmem:[#allocation27_spill] sm:$0xff] %v2467_v55 }
 0x104   :  { %v171_v58 = vpop.permute.xlu0 %170 }
 0x105   :  { %v189_v43 = vmul.f32 %v2469_v56, %v171_v58  ;;  %v190_v44 = vmul.f32 %v2471_v57, %v171_v58 }
 0x107   :  { %v204_v63 = vadd.f32 %v2473_v59, %v189_v43  ;;  %v205_v0 = vadd.f32 %v2475_v60, %v190_v44  ;;  %v263_v43 = vadd.f32 %v262_v53, %v2467_v55 }
 0x109   :  { %v288_v41 = vadd.f32 %v237_v61, %v204_v63  ;;  %v328_v2 = vadd.f32 %v260_v62, %v205_v0 }
 0x10b   :  { %v1718_v17 = vmul.f32 -1.442695, %v288_v41  ;;  %v1720_v39 = vmul.f32 -1.442695, %v328_v2 }
 0x10c   :  { %v2483_v22 = vpop.permute.xlu0 %175 }
 0x10d   :  { %1801 = vpow2.f32 %v1718_v17  ;;  %v192_v14 = vmul.f32 %v2469_v56, %v2483_v22  ;;  %v193_v45 = vmul.f32 %v2471_v57, %v2483_v22 }
 0x10e   :  { %1803 = vpow2.f32 %v1720_v39  ;;  %v103_v39 = vld [vmem:[%s3227_s2 + $0x8] sm:$0xf] }
 0x10f   :  { %v207_v44 = vadd.f32 %v2473_v59, %v192_v14  ;;  %v208_v61 = vadd.f32 %v2475_v60, %v193_v45 }
 0x111   :  { %v289_v41 = vadd.f32 %v240_v40, %v207_v44  ;;  %v329_v62 = vadd.f32 %v263_v43, %v208_v61  ;;  %v182_v40 = vperm.slane %v103_v39, 0  ;;  %v212_v44 = vperm.slane %v103_v39, 2 }
 0x113   :  { %v1802_v63 = vpop.eup %1801  ;;  %v1719_v0 = vmul.f32 -1.442695, %v289_v41  ;;  %v1721_v17 = vmul.f32 -1.442695, %v329_v62  ;;  %v2508_v60 = vperm.slane %v212_v44, 2 }
 0x114   :  { %v1804_v2 = vpop.eup %1803  ;;  %v296_v42 = vadd.f32 1.0, %v1802_v63  ;;  %v282_v63 = vpop.f32.mrf.mxu3 }
 0x115   :  { %v2493_v54 = vadd.f32 1.0, %v1804_v2  ;;  %1805 = vpow2.f32 %v1719_v0  ;;  %v2505_v2 = vperm.slane %v182_v40, 0  ;;  %v283_v40 = vadd.f32 %v282_v63, %v2508_v60 }
 0x116   :  { %1807 = vrcp.f32 %v296_v42  ;;  %v307_v57 = vand.u32 2147483647, %v296_v42  ;;  %v309_v56 = vand.u32 2147483648, %v296_v42  ;;  %vm303_vm2 = vweird.f32 %v296_v42 }
 0x117   :  { %1809 = vrcp.f32 %v2493_v54  ;;  %v191_v59 = vmul.f32 %v2505_v2, %v171_v58  ;;  %v349_v35 = vand.u32 2147483648, %v2493_v54  ;;  %vm343_vm7 = vweird.f32 %v2493_v54 }
 0x118   :  { %1811 = vpow2.f32 %v1721_v17  ;;  %v197_v17 = vperm.slane %v103_v39, 1  ;;  %vm308_vm4 = vcmp.eq.f32.partialorder %v307_v57, 8.507059e+37 }
 0x11a   :  { %v2511_v38 = vperm.slane %v197_v17, 1 }
 0x11b   :  { %v1806_v53 = vpop.eup %1805 }
 0x11c   :  { %v1808_v14 = vpop.eup %1807  ;;  %v297_v45 = vadd.f32 1.0, %v1806_v53  ;;  %v206_v44 = vadd.f32 %v2511_v38, %v191_v59 }
 0x11d   :  { %v2499_v43 = vpop.eup %1809  ;;  %v299_v61 = vmul.f32 %v1808_v14, %v296_v42  ;;  %vm304_vm1 = vweird.f32 %v1808_v14 }
 0x11e   :  { %v1812_v41 = vpop.eup %1811  ;;  %v339_v62 = vmul.f32 %v2499_v43, %v2493_v54  ;;  %1813 = vrcp.f32 %v297_v45  ;;  %vm305_vm3 = vmor %vm303_vm2, %vm304_vm1  ;;  %vm344_vm5 = vweird.f32 %v2499_v43  ;;  %v322_v59 = vand.u32 2147483647, %v297_v45 }
 0x11f   :  { %v2503_v0 = vadd.f32 1.0, %v1812_v41  ;;  %v300_v53 = vsub.f32 1.0, %v299_v61  ;;  %v310_v61 = vor.u32 1.1754944e-38, %v309_v56  ;;  %v194_v56 = vmul.f32 %v2505_v2, %v2483_v22  ;;  %vm2525_vm9 = vmor %vm343_vm7, %vm344_vm5 }
 0x120   :  { %v340_v55 = vsub.f32 1.0, %v339_v62  ;;  %vm318_vm8 = vweird.f32 %v297_v45  ;;  %vm323_vm11 = vcmp.eq.f32.partialorder %v322_v59, 8.507059e+37 }
 0x121   :  { %1815 = vrcp.f32 %v2503_v0  ;;  %v301_v52 = vmul.f32 %v1808_v14, %v300_v53  ;;  %v324_v53 = vand.u32 2147483648, %v297_v45  ;;  %vm358_vm14 = vweird.f32 %v2503_v0 }
 0x122   :  { %v341_v41 = vmul.f32 %v2499_v43, %v340_v55  ;;  %v285_v55 = vpop.f32.mrf.mxu3 }
 0x123   :  { %v302_v39 = vadd.f32 %v1808_v14, %v301_v52 }
 0x124   :  { %v1814_v36 = vpop.eup %1813  ;;  %v342_v63 = vadd.f32 %v2499_v43, %v341_v41 }
 0x125   :  { %v314_v62 = vmul.f32 %v1814_v36, %v297_v45  ;;  %v306_v51 = vsel %vm305_vm3, %v1808_v14, %v302_v39  ;;  %vm319_vm6 = vweird.f32 %v1814_v36  ;;  %v347_v14 = vand.u32 2147483647, %v2493_v54 }
 0x126   :  { %v311_v50 = vsel %vm308_vm4, %v310_v61, %v306_v51  ;;  %v286_v51 = vadd.f32 %v285_v55, %v2508_v60  ;;  %vm320_vm10 = vmor %vm318_vm8, %vm319_vm6  ;;  %v350_v54 = vor.u32 1.1754944e-38, %v349_v35  ;;  %v209_v45 = vadd.f32 %v2511_v38, %v194_v56 }
 0x127   :  { %v1816_v58 = vpop.eup %1815  ;;  %v315_v33 = vsub.f32 1.0, %v314_v62  ;;  %v368_v52 = vmul.f32 %v311_v50, %v283_v40  ;;  %v346_v50 = vsel %vm2525_vm9, %v2499_v43, %v342_v63  ;;  %vm348_vm12 = vcmp.eq.f32.partialorder %v347_v14, 8.507059e+37 }
 0x128   :  { %v354_v17 = vmul.f32 %v1816_v58, %v2503_v0  ;;  %vm359_vm13 = vweird.f32 %v1816_v58  ;;  %v351_v55 = vsel %vm348_vm12, %v350_v54, %v346_v50 }
 0x129   :  { %v316_v42 = vmul.f32 %v1814_v36, %v315_v33  ;;  %v370_v39 = vadd.f32 %v368_v52, %v206_v44  ;;  %v325_v33 = vor.u32 1.1754944e-38, %v324_v53  ;;  %v364_v52 = vand.u32 2147483648, %v2503_v0  ;;  %vm360_vm15 = vmor %vm358_vm14, %vm359_vm13 }
 0x12a   :  { %v355_v57 = vsub.f32 1.0, %v354_v17  ;;  %v362_v53 = vand.u32 2147483647, %v2503_v0  ;;  %v374_v63 = vsub.f32 1.0, %v351_v55 }
 0x12b   :  { %v317_v62 = vadd.f32 %v1814_v36, %v316_v42  ;;  %1817 = vtanh.f32 %v370_v39  ;;  %v365_v35 = vor.u32 1.1754944e-38, %v364_v52 }
 0x12c   :  { %v356_v22 = vmul.f32 %v1816_v58, %v355_v57  ;;  %v378_v57 = vmul.f32 0.0, %v351_v55  ;;  %vm363_vm0 = vcmp.eq.f32.partialorder %v362_v53, 8.507059e+37 }
 0x12d   :  { %v321_v40 = vsel %vm320_vm10, %v1814_v36, %v317_v62 }
 0x12e   :  { %v326_v44 = vsel %vm323_vm11, %v325_v33, %v321_v40  ;;  %v357_v61 = vadd.f32 %v1816_v58, %v356_v22 }
 0x12f   :  { %v369_v17 = vmul.f32 %v326_v44, %v286_v51 }
 0x130   :  { %v361_v36 = vsel %vm360_vm15, %v1816_v58, %v357_v61 }
 0x131   :  { %v371_v43 = vadd.f32 %v369_v17, %v209_v45  ;;  %v1818_v42 = vpop.eup %1817  ;;  %v366_v14 = vsel %vm363_vm0, %v365_v35, %v361_v36 }
 0x132   :  { %v376_v59 = vmul.f32 %v1818_v42, %v374_v63  ;;  %v375_v39 = vsub.f32 1.0, %v366_v14  ;;  %v379_v58 = vmul.f32 0.0, %v366_v14 }
 0x133   :  { %1819 = vtanh.f32 %v371_v43 }
 0x134   :  { %v2536_v56 = vadd.f32 %v378_v57, %v376_v59 }
 0x136   :  { %418 = vmatmul.f32.vlgmr.msrb.gmra.mxu0 %v2536_v56  ;;  %441 = vmatmul.f32.vlgmr.msrb.gmra.mxu1 %v2536_v56 }
 0x137   :  { %464 = vmatmul.f32.vlgmr.msrb.gmra.mxu2 %v2536_v56  ;;  %814 = vmatpush.msrb.mxu0 %v2223_v16  ;;  %v3337_v16 = vld [vmem:[#allocation20_spill] sm:$0xff] }
 0x138   :  { %951 = vmatpush.msrb.mxu1 %v2189_v4  ;;  %974 = vmatpush.msrb.mxu2 %v2184_v1  ;;  %v3324_v1 = vld [vmem:[#allocation22_spill] sm:$0xff]  ;;  %v3326_v4 = vld [vmem:[#allocation12_spill] sm:$0xff] }
 0x139   :  { %v1820_v51 = vpop.eup %1819  ;;  %815 = vmatpush.msrb.mxu0 %v2229_v19  ;;  %v3338_v19 = vld [vmem:[#allocation28_spill] sm:$0xff] }
 0x13a   :  { %v377_v0 = vmul.f32 %v1820_v51, %v375_v39  ;;  %952 = vmatpush.msrb.mxu1 %v2194_v6  ;;  %975 = vmatpush.msrb.mxu2 %v2187_v3  ;;  %v3325_v3 = vld [vmem:[#allocation13_spill] sm:$0xff]  ;;  %v3328_v6 = vld [vmem:[#allocation15_spill] sm:$0xff] }
 0x13b   :  { %816 = vmatpush.msrb.mxu0 %v2234_v21  ;;  %v3339_v21 = vld [vmem:[#allocation29_spill] sm:$0xff] }
 0x13c   :  { %v2545_v62 = vadd.f32 %v379_v58, %v377_v0  ;;  %953 = vmatpush.msrb.mxu1 %v2197_v7  ;;  %976 = vmatpush.msrb.mxu2 %v2191_v5  ;;  %v3327_v5 = vld [vmem:[#allocation23_spill] sm:$0xff]  ;;  %v3329_v7 = vld [vmem:[#allocation14_spill] sm:$0xff] }
 0x13d   :  { %817 = vmatpush.msrb.mxu0 %v2243_v25 }
 0x13e   :  { %421 = vmatmul.f32.gmra.mxu0 %v2545_v62  ;;  %444 = vmatmul.f32.gmra.mxu1 %v2545_v62 }
 0x13f   :  { %467 = vmatmul.f32.gmra.mxu2 %v2545_v62  ;;  %818 = vmatpush.msrb.mxu0 %v2253_v28  ;;  %v3341_v28 = vld [vmem:[#allocation26_spill] sm:$0xff] }
 0x140   :  { %954 = vmatpush.msrb.mxu1 %v2204_v9  ;;  %977 = vmatpush.msrb.mxu2 %v2200_v8  ;;  %v3330_v8 = vld [vmem:[#allocation24_spill] sm:$0xff]  ;;  %v3331_v9 = vld [vmem:[#allocation17_spill] sm:$0xff] }
 0x141   :  { %819 = vmatpush.msrb.mxu0 %v2263_v31 }
 0x142   :  { %955 = vmatpush.msrb.mxu1 %v2211_v11  ;;  %978 = vmatpush.msrb.mxu2 %v2206_v10  ;;  %v3332_v10 = vld [vmem:[#allocation16_spill] sm:$0xff]  ;;  %v3333_v11 = vld [vmem:[#allocation25_spill] sm:$0xff] }
 0x143   :  { %820 = vmatpush.msrb.mxu0 %v2273_v34 }
 0x144   :  { %956 = vmatpush.msrb.mxu1 %v2218_v13  ;;  %979 = vmatpush.msrb.mxu2 %v2213_v12  ;;  %v3334_v12 = vld [vmem:[#allocation19_spill] sm:$0xff]  ;;  %v3335_v13 = vld [vmem:[#allocation18_spill] sm:$0xff] }
 0x145   :  { %821 = vmatpush.msrb.mxu0 %v2283_v37 }
 0x146   :  { %957 = vmatpush.msrb.mxu1 %v2226_v18  ;;  %980 = vmatpush.msrb.mxu2 %v2220_v15  ;;  %v3336_v15 = vld [vmem:[#allocation21_spill] sm:$0xff]  ;;  %v384_v18 = vpop.permute.xlu1 %383 }
 0x147   :  { %822 = vmatpush.msrb.mxu0 %v2372_v46 }
 0x148   :  { %958 = vmatpush.msrb.mxu1 %v2237_v23  ;;  %981 = vmatpush.msrb.mxu2 %v2231_v20  ;;  %v390_v20 = vmul.f32 %v384_v18, %v3338_v19  ;;  %v391_v23 = vmul.f32 %v384_v18, %v3339_v21 }
 0x149   :  { %823 = vmatpush.msrb.mxu0 %v2376_v47 }
 0x14a   :  { %959 = vmatpush.msrb.mxu1 %v2247_v26  ;;  %982 = vmatpush.msrb.mxu2 %v2240_v24  ;;  %v3340_v26 = vld [vmem:[#allocation30_spill] sm:$0xff] }
 0x14b   :  { %824 = vmatpush.msrb.mxu0 %v2378_v48 }
 0x14c   :  { %960 = vmatpush.msrb.mxu1 %v2257_v29  ;;  %983 = vmatpush.msrb.mxu2 %v2250_v27  ;;  %v396_v27 = vadd.f32 %v390_v20, %v3340_v26  ;;  %v392_v20 = vmul.f32 %v384_v18, %v2505_v2 }
 0x14d   :  { %825 = vmatpush.msrb.mxu0 %v2383_v49 }
 0x14e   :  { %961 = vmatpush.msrb.mxu1 %v2267_v32  ;;  %984 = vmatpush.msrb.mxu2 %v2260_v30  ;;  %v3342_v30 = vld [vmem:[#allocation31_spill] sm:$0xff]  ;;  %v2600_v37 = vpop.permute.xlu1 %387 }
 0x14f   :  { %826 = vmatpush.msrb.mxu0 %v3324_v1  ;;  %v397_v31 = vadd.f32 %v391_v23, %v3342_v30  ;;  %v3343_v32 = vld [vmem:[#allocation27_spill] sm:$0xff]  ;;  %v393_v50 = vmul.f32 %v2600_v37, %v3338_v19  ;;  %v394_v22 = vmul.f32 %v2600_v37, %v3339_v21 }
 0x150   :  { %962 = vmatpush.msrb.mxu1 %v3325_v3  ;;  %985 = vmatpush.msrb.mxu2 %v3326_v4 }
 0x151   :  { %827 = vmatpush.msrb.mxu0 %v3327_v5  ;;  %v399_v45 = vadd.f32 %v393_v50, %v3340_v26  ;;  %v400_v55 = vadd.f32 %v394_v22, %v3342_v30  ;;  %v398_v50 = vadd.f32 %v392_v20, %v2511_v38 }
 0x152   :  { %963 = vmatpush.msrb.mxu1 %v3328_v6  ;;  %986 = vmatpush.msrb.mxu2 %v3329_v7 }
 0x153   :  { %828 = vmatpush.msrb.mxu0 %v3330_v8 }
 0x154   :  { %964 = vmatpush.msrb.mxu1 %v3331_v9  ;;  %987 = vmatpush.msrb.mxu2 %v3332_v10 }
 0x155   :  { %829 = vmatpush.msrb.mxu0 %v3333_v11 }
 0x156   :  { %965 = vmatpush.msrb.mxu1 %v3334_v12  ;;  %988 = vmatpush.msrb.mxu2 %v3335_v13 }
 0x158   :  { %966 = vmatpush.msrb.mxu1 %v3336_v15  ;;  %989 = vmatpush.msrb.mxu2 %v3337_v16 }
 0x1b3   :  { %v419_v24 = vpop.f32.mrf.mxu0  ;;  %v442_v25 = vpop.f32.mrf.mxu1 }
 0x1b4   :  { %v420_v29 = vadd.f32 %v419_v24, %v3341_v28  ;;  %v443_v34 = vadd.f32 %v442_v25, %v3343_v32 }
 0x1b6   :  { %v471_v41 = vadd.f32 %v420_v29, %v396_v27  ;;  %v511_v33 = vadd.f32 %v443_v34, %v397_v31 }
 0x1b8   :  { %v1722_v40 = vmul.f32 -1.442695, %v471_v41  ;;  %v1724_v54 = vmul.f32 -1.442695, %v511_v33 }
 0x1ba   :  { %1821 = vpow2.f32 %v1722_v40  ;;  %v465_v10 = vpop.f32.mrf.mxu2 }
 0x1bb   :  { %1823 = vpow2.f32 %v1724_v54  ;;  %v422_v44 = vpop.f32.mrf.mxu0  ;;  %v445_v61 = vpop.f32.mrf.mxu1  ;;  %v466_v27 = vadd.f32 %v465_v10, %v2508_v60 }
 0x1bc   :  { %v423_v17 = vadd.f32 %v422_v44, %v3341_v28  ;;  %v446_v52 = vadd.f32 %v445_v61, %v3343_v32 }
 0x1be   :  { %v472_v53 = vadd.f32 %v423_v17, %v399_v45  ;;  %v512_v43 = vadd.f32 %v446_v52, %v400_v55  ;;  %v2687_v52 = vld [vmem:[#allocation5 + $0x110] sm:$0xff] }
 0x1c0   :  { %v1822_v63 = vpop.eup %1821  ;;  %v1723_v36 = vmul.f32 -1.442695, %v472_v53  ;;  %v1725_v59 = vmul.f32 -1.442695, %v512_v43  ;;  %v395_v53 = vmul.f32 %v2600_v37, %v2505_v2 }
 0x1c1   :  { %v1824_v42 = vpop.eup %1823  ;;  %v479_v35 = vadd.f32 1.0, %v1822_v63 }
 0x1c2   :  { %v519_v57 = vadd.f32 1.0, %v1824_v42  ;;  %1825 = vpow2.f32 %v1723_v36  ;;  %v468_v63 = vpop.f32.mrf.mxu2 }
 0x1c3   :  { %1827 = vrcp.f32 %v479_v35  ;;  %v492_v12 = vand.u32 2147483648, %v479_v35  ;;  %v490_v15 = vand.u32 2147483647, %v479_v35  ;;  %vm486_vm2 = vweird.f32 %v479_v35 }
 0x1c4   :  { %1829 = vrcp.f32 %v519_v57  ;;  %v532_v54 = vand.u32 2147483648, %v519_v57  ;;  %vm526_vm6 = vweird.f32 %v519_v57  ;;  %v530_v61 = vand.u32 2147483647, %v519_v57 }
 0x1c5   :  { %1831 = vpow2.f32 %v1725_v59  ;;  %v493_v25 = vor.u32 1.1754944e-38, %v492_v12  ;;  %vm491_vm4 = vcmp.eq.f32.partialorder %v490_v15, 8.507059e+37 }
 0x1c6   :  { %vm531_vm11 = vcmp.eq.f32.partialorder %v530_v61, 8.507059e+37  ;;  %v2675_v61 = vld [vmem:[#allocation5 + $0x120] sm:$0xff] }
 0x1c8   :  { %v1826_v14 = vpop.eup %1825 }
 0x1c9   :  { %v1828_v39 = vpop.eup %1827  ;;  %v480_v51 = vadd.f32 1.0, %v1826_v14  ;;  %v469_v14 = vadd.f32 %v468_v63, %v2508_v60  ;;  %v2696_v63 = vld [vmem:[#allocation5 + $0xf8] sm:$0xff] }
 0x1ca   :  { %v1830_v0 = vpop.eup %1829  ;;  %v482_v58 = vmul.f32 %v1828_v39, %v479_v35  ;;  %vm487_vm1 = vweird.f32 %v1828_v39  ;;  %v533_v35 = vor.u32 1.1754944e-38, %v532_v54  ;;  %v2660_v54 = vld [vmem:[#allocation5 + $0x138] sm:$0xff] }
 0x1cb   :  { %v1832_v3 = vpop.eup %1831  ;;  %v522_v4 = vmul.f32 %v1830_v0, %v519_v57  ;;  %1833 = vrcp.f32 %v480_v51  ;;  %vm488_vm3 = vmor %vm486_vm2, %vm487_vm1  ;;  %vm527_vm5 = vweird.f32 %v1830_v0  ;;  %v507_v44 = vand.u32 2147483648, %v480_v51 }
 0x1cc   :  { %v483_v6 = vsub.f32 1.0, %v482_v58  ;;  %v2610_v7 = vadd.f32 1.0, %v1832_v3  ;;  %v505_v55 = vand.u32 2147483647, %v480_v51  ;;  %vm2617_vm8 = vmor %vm526_vm6, %vm527_vm5  ;;  %vm501_vm9 = vweird.f32 %v480_v51 }
 0x1cd   :  { %v523_v9 = vsub.f32 1.0, %v522_v4  ;;  %v508_v59 = vor.u32 1.1754944e-38, %v507_v44  ;;  %v401_v4 = vadd.f32 %v395_v53, %v2511_v38  ;;  %v2672_v44 = vld [vmem:[#allocation5 + $0x118] sm:$0xff]  ;;  %v2690_v53 = vld [vmem:[#allocation5 + $0xe8] sm:$0xff] }
 0x1ce   :  { %v484_v13 = vmul.f32 %v1828_v39, %v483_v6  ;;  %1835 = vrcp.f32 %v2610_v7  ;;  %vm506_vm12 = vcmp.eq.f32.partialorder %v505_v55, 8.507059e+37  ;;  %vm541_vm14 = vweird.f32 %v2610_v7  ;;  %v2684_v55 = vld [vmem:[#allocation5 + $0x108] sm:$0xff] }
 0x1cf   :  { %v524_v16 = vmul.f32 %v1830_v0, %v523_v9 }
 0x1d0   :  { %v485_v23 = vadd.f32 %v1828_v39, %v484_v13 }
 0x1d1   :  { %v1834_v24 = vpop.eup %1833  ;;  %v525_v41 = vadd.f32 %v1830_v0, %v524_v16 }
 0x1d2   :  { %v489_v29 = vsel %vm488_vm3, %v1828_v39, %v485_v23  ;;  %v497_v31 = vmul.f32 %v1834_v24, %v480_v51  ;;  %vm502_vm7 = vweird.f32 %v1834_v24  ;;  %v545_v51 = vand.u32 2147483647, %v2610_v7 }
 0x1d3   :  { %v494_v34 = vsel %vm491_vm4, %v493_v25, %v489_v29  ;;  %v529_v36 = vsel %vm2617_vm8, %v1830_v0, %v525_v41  ;;  %vm503_vm10 = vmor %vm501_vm9, %vm502_vm7  ;;  %v547_v0 = vand.u32 2147483648, %v2610_v7 }
 0x1d4   :  { %v1836_v33 = vpop.eup %1835  ;;  %v551_v22 = vmul.f32 %v494_v34, %v466_v27  ;;  %v498_v40 = vsub.f32 1.0, %v497_v31  ;;  %v534_v58 = vsel %vm531_vm11, %v533_v35, %v529_v36  ;;  %vm546_vm0 = vcmp.eq.f32.partialorder %v545_v51, 8.507059e+37  ;;  %v2639_v27 = vld [vmem:[#allocation5 + $0x168] sm:$0xff]  ;;  %v2645_v31 = vld [vmem:[#allocation5 + $0x160] sm:$0xff]  ;;  %v2699_v36 = vld [vmem:[#allocation5 + $0xd0] sm:$0xff]  ;;  %v567_v51 = vpop.permute.xlu2 %566 }
 0x1d5   :  { %v537_v18 = vmul.f32 %v1836_v33, %v2610_v7  ;;  %vm542_vm13 = vweird.f32 %v1836_v33  ;;  %v557_v9 = vsub.f32 1.0, %v534_v58  ;;  %v561_v15 = vmul.f32 %v534_v58, %v2536_v56  ;;  %v2636_v7 = vld [vmem:[#allocation5 + $0x178] sm:$0xff]  ;;  %v2642_v56 = vld [vmem:[#allocation5 + $0x170] sm:$0xff]  ;;  %v2705_v35 = vld [vmem:[#allocation5 + $0xe0] sm:$0xff] }
 0x1d6   :  { %v553_v45 = vadd.f32 %v551_v22, %v398_v50  ;;  %v499_v17 = vmul.f32 %v1834_v24, %v498_v40  ;;  %vm543_vm15 = vmor %vm541_vm14, %vm542_vm13  ;;  %v548_v20 = vor.u32 1.1754944e-38, %v547_v0  ;;  %v2652_v50 = vld [vmem:[#allocation5 + $0x158] sm:$0xff]  ;;  %v2655_v22 = vld [vmem:[#allocation5 + $0x148] sm:$0xff] }
 0x1d7   :  { %v538_v43 = vsub.f32 1.0, %v537_v18  ;;  %v2663_v18 = vld [vmem:[#allocation5 + $0x140] sm:$0xff]  ;;  %v2726_v58 = vld [vmem:[#allocation5 + $0x98] sm:$0xff] }
 0x1d8   :  { %1837 = vtanh.f32 %v553_v45  ;;  %v500_v42 = vadd.f32 %v1834_v24, %v499_v17  ;;  %v2678_v45 = vld [vmem:[#allocation5 + $0x128] sm:$0xff]  ;;  %v2681_v17 = vld [vmem:[#allocation5 + $0x100] sm:$0xff] }
 0x1d9   :  { %v539_v57 = vmul.f32 %v1836_v33, %v538_v43  ;;  %v2693_v43 = vld [vmem:[#allocation5 + $0xf0] sm:$0xff]  ;;  %v2761_v0 = vld [vmem:[#allocation5 + $0x20] sm:$0xff] }
 0x1da   :  { %v504_v39 = vsel %vm503_vm10, %v1834_v24, %v500_v42  ;;  %v2702_v42 = vld [vmem:[#allocation5 + $0xd8] sm:$0xff]  ;;  %3355 = vst [vmem:[#allocation25_spill] sm:$0xff] %v2761_v0 }
 0x1db   :  { %v509_v3 = vsel %vm506_vm12, %v508_v59, %v504_v39  ;;  %v540_v37 = vadd.f32 %v1836_v33, %v539_v57  ;;  %v2709_v59 = vld [vmem:[#allocation5 + $0xc0] sm:$0xff]  ;;  %v2712_v57 = vld [vmem:[#allocation5 + $0xc8] sm:$0xff]  ;;  %v2719_v39 = vld [vmem:[#allocation5 + $0xb0] sm:$0xff] }
 0x1dc   :  { %v552_v6 = vmul.f32 %v509_v3, %v469_v14  ;;  %v2716_v14 = vld [vmem:[#allocation5 + $0xa8] sm:$0xff]  ;;  %v2733_v3 = vld [vmem:[#allocation5 + $0x80] sm:$0xff] }
 0x1dd   :  { %v544_v16 = vsel %vm543_vm15, %v1836_v33, %v540_v37  ;;  %v2649_v33 = vld [vmem:[#allocation5 + $0x150] sm:$0xff]  ;;  %3347 = vst [vmem:[#allocation13_spill] sm:$0xff] %v2733_v3  ;;  %v2740_v37 = vld [vmem:[#allocation5 + $0x68] sm:$0xff] }
 0x1de   :  { %v1838_v10 = vpop.eup %1837  ;;  %v554_v12 = vadd.f32 %v552_v6, %v401_v4  ;;  %v549_v24 = vsel %vm546_vm0, %v548_v20, %v544_v16  ;;  %3349 = vst [vmem:[#allocation23_spill] sm:$0xff] %v2740_v37  ;;  %v2747_v4 = vld [vmem:[#allocation5 + $0x50] sm:$0xff]  ;;  %v2754_v6 = vld [vmem:[#allocation5 + $0x38] sm:$0xff]  ;;  %v573_v16 = vmul.f32 %v567_v51, %v3338_v19 }
 0x1df   :  { %v559_v13 = vmul.f32 %v1838_v10, %v557_v9  ;;  %v558_v25 = vsub.f32 1.0, %v549_v24  ;;  %v562_v41 = vmul.f32 %v549_v24, %v2545_v62  ;;  %v2666_v62 = vld [vmem:[#allocation5 + $0x130] sm:$0xff]  ;;  %3351 = vst [vmem:[#allocation14_spill] sm:$0xff] %v2747_v4  ;;  %v2764_v9 = vld [vmem:[#allocation5] sm:$0xff]  ;;  %v574_v10 = vmul.f32 %v567_v51, %v3339_v21 }
 0x1e0   :  { %1839 = vtanh.f32 %v554_v12  ;;  %3353 = vst [vmem:[#allocation17_spill] sm:$0xff] %v2754_v6 }
 0x1e1   :  { %v2631_v23 = vadd.f32 %v561_v15, %v559_v13  ;;  %3356 = vst [vmem:[#allocation19_spill] sm:$0xff] %v2764_v9  ;;  %v580_v12 = vadd.f32 %v574_v10, %v3342_v30  ;;  %v2773_v15 = vpop.permute.xlu2 %570 }
 0x1e2   :  { %v577_v24 = vmul.f32 %v2773_v15, %v3339_v21 }
 0x1e3   :  { %601 = vmatmul.f32.vlgmr.msrb.gmra.mxu3 %v2631_v23  ;;  %624 = vmatmul.f32.vlgmr.msra.gmra.mxu0 %v2631_v23 }
 0x1e4   :  { %647 = vmatmul.f32.vlgmr.msra.gmra.mxu1 %v2631_v23  ;;  %997 = vmatpush.msrb.mxu3 %v2636_v7  ;;  %v583_v10 = vadd.f32 %v577_v24, %v3342_v30 }
 0x1e5   :  { %1134 = vmatpush.msra.mxu0 %v2639_v27  ;;  %1157 = vmatpush.msra.mxu1 %v2642_v56 }
 0x1e6   :  { %v1840_v29 = vpop.eup %1839  ;;  %998 = vmatpush.msrb.mxu3 %v2645_v31 }
 0x1e7   :  { %v560_v34 = vmul.f32 %v1840_v29, %v558_v25  ;;  %1135 = vmatpush.msra.mxu0 %v2649_v33  ;;  %1158 = vmatpush.msra.mxu1 %v2652_v50 }
 0x1e8   :  { %999 = vmatpush.msrb.mxu3 %v2655_v22 }
 0x1e9   :  { %v2658_v40 = vadd.f32 %v562_v41, %v560_v34  ;;  %1136 = vmatpush.msra.mxu0 %v2660_v54  ;;  %1159 = vmatpush.msra.mxu1 %v2663_v18  ;;  %v579_v34 = vadd.f32 %v573_v16, %v3340_v26 }
 0x1ea   :  { %1000 = vmatpush.msrb.mxu3 %v2666_v62 }
 0x1eb   :  { %604 = vmatmul.f32.gmra.mxu3 %v2658_v40  ;;  %627 = vmatmul.f32.gmra.mxu0 %v2658_v40 }
 0x1ec   :  { %650 = vmatmul.f32.gmra.mxu1 %v2658_v40  ;;  %1001 = vmatpush.msrb.mxu3 %v2672_v44 }
 0x1ed   :  { %1137 = vmatpush.msra.mxu0 %v2675_v61  ;;  %1160 = vmatpush.msra.mxu1 %v2678_v45 }
 0x1ee   :  { %1002 = vmatpush.msrb.mxu3 %v2681_v17 }
 0x1ef   :  { %1138 = vmatpush.msra.mxu0 %v2684_v55  ;;  %1161 = vmatpush.msra.mxu1 %v2687_v52 }
 0x1f0   :  { %1003 = vmatpush.msrb.mxu3 %v2690_v53 }
 0x1f1   :  { %1139 = vmatpush.msra.mxu0 %v2693_v43  ;;  %1162 = vmatpush.msra.mxu1 %v2696_v63 }
 0x1f2   :  { %1004 = vmatpush.msrb.mxu3 %v2699_v36 }
 0x1f3   :  { %1140 = vmatpush.msra.mxu0 %v2702_v42  ;;  %1163 = vmatpush.msra.mxu1 %v2705_v35 }
 0x1f4   :  { %1005 = vmatpush.msrb.mxu3 %v2372_v46  ;;  %v2723_v46 = vld [vmem:[#allocation5 + $0x90] sm:$0xff] }
 0x1f5   :  { %1141 = vmatpush.msra.mxu0 %v2709_v59  ;;  %1164 = vmatpush.msra.mxu1 %v2712_v57 }
 0x1f6   :  { %1006 = vmatpush.msrb.mxu3 %v2376_v47  ;;  %v2730_v47 = vld [vmem:[#allocation5 + $0x78] sm:$0xff] }
 0x1f7   :  { %1142 = vmatpush.msra.mxu0 %v2716_v14  ;;  %1165 = vmatpush.msra.mxu1 %v2719_v39  ;;  %3346 = vst [vmem:[#allocation22_spill] sm:$0xff] %v2730_v47 }
 0x1f8   :  { %1007 = vmatpush.msrb.mxu3 %v2378_v48  ;;  %v2737_v48 = vld [vmem:[#allocation5 + $0x60] sm:$0xff] }
 0x1f9   :  { %1143 = vmatpush.msra.mxu0 %v2723_v46  ;;  %1166 = vmatpush.msra.mxu1 %v2726_v58  ;;  %3348 = vst [vmem:[#allocation12_spill] sm:$0xff] %v2737_v48 }
 0x1fa   :  { %1008 = vmatpush.msrb.mxu3 %v2383_v49  ;;  %v2744_v49 = vld [vmem:[#allocation5 + $0x48] sm:$0xff] }
 0x1fb   :  { %1144 = vmatpush.msra.mxu0 %v2730_v47  ;;  %1167 = vmatpush.msra.mxu1 %v2733_v3  ;;  %3350 = vst [vmem:[#allocation15_spill] sm:$0xff] %v2744_v49 }
 0x1fc   :  { %1009 = vmatpush.msrb.mxu3 %v3324_v1  ;;  %v2751_v1 = vld [vmem:[#allocation5 + $0x30] sm:$0xff] }
 0x1fd   :  { %1145 = vmatpush.msra.mxu0 %v2737_v48  ;;  %1168 = vmatpush.msra.mxu1 %v2740_v37  ;;  %3352 = vst [vmem:[#allocation24_spill] sm:$0xff] %v2751_v1 }
 0x1fe   :  { %1010 = vmatpush.msrb.mxu3 %v3327_v5  ;;  %v2758_v5 = vld [vmem:[#allocation5 + $0x18] sm:$0xff] }
 0x1ff   :  { %1146 = vmatpush.msra.mxu0 %v2744_v49  ;;  %1169 = vmatpush.msra.mxu1 %v2747_v4  ;;  %3354 = vst [vmem:[#allocation16_spill] sm:$0xff] %v2758_v5 }
 0x200   :  { %1011 = vmatpush.msrb.mxu3 %v3330_v8  ;;  %v2767_v8 = vld [vmem:[#allocation5 + $0x8] sm:$0xff] }
 0x201   :  { %1147 = vmatpush.msra.mxu0 %v2751_v1  ;;  %1170 = vmatpush.msra.mxu1 %v2754_v6  ;;  %3357 = vst [vmem:[#allocation18_spill] sm:$0xff] %v2767_v8 }
 0x202   :  { %1012 = vmatpush.msrb.mxu3 %v3333_v11 }
 0x203   :  { %1148 = vmatpush.msra.mxu0 %v2758_v5  ;;  %1171 = vmatpush.msra.mxu1 %v2761_v0  ;;  %v576_v0 = vmul.f32 %v2773_v15, %v3338_v19 }
 0x205   :  { %1149 = vmatpush.msra.mxu0 %v2764_v9  ;;  %1172 = vmatpush.msra.mxu1 %v2767_v8  ;;  %v582_v16 = vadd.f32 %v576_v0, %v3340_v26 }
 0x260   :  { %v625_v11 = vpop.f32.mrf.mxu0 }
 0x261   :  { %v626_v13 = vadd.f32 %v625_v11, %v3343_v32 }
 0x263   :  { %v694_v20 = vadd.f32 %v626_v13, %v580_v12 }
 0x265   :  { %v1728_v25 = vmul.f32 -1.442695, %v694_v20 }
 0x266   :  { %v602_v29 = vpop.f32.mrf.mxu3 }
 0x267   :  { %1841 = vpow2.f32 %v1728_v25  ;;  %v603_v41 = vadd.f32 %v602_v29, %v3341_v28 }
 0x268   :  { %v628_v8 = vpop.f32.mrf.mxu0 }
 0x269   :  { %v654_v9 = vadd.f32 %v603_v41, %v579_v34  ;;  %v629_v11 = vadd.f32 %v628_v8, %v3343_v32 }
 0x26b   :  { %v1726_v12 = vmul.f32 -1.442695, %v654_v9  ;;  %v695_v13 = vadd.f32 %v629_v11, %v583_v10 }
 0x26d   :  { %v1842_v5 = vpop.eup %1841  ;;  %1843 = vpow2.f32 %v1726_v12  ;;  %v1729_v20 = vmul.f32 -1.442695, %v695_v13 }
 0x26e   :  { %v2784_v21 = vadd.f32 1.0, %v1842_v5  ;;  %v605_v25 = vpop.f32.mrf.mxu3 }
 0x26f   :  { %1845 = vpow2.f32 %v1729_v20  ;;  %v606_v29 = vadd.f32 %v605_v25, %v3341_v28  ;;  %v575_v28 = vmul.f32 %v567_v51, %v2505_v2 }
 0x270   :  { %1847 = vrcp.f32 %v2784_v21  ;;  %vm709_vm6 = vweird.f32 %v2784_v21 }
 0x271   :  { %v655_v24 = vadd.f32 %v606_v29, %v582_v16  ;;  %v648_v29 = vpop.f32.mrf.mxu1  ;;  %v581_v49 = vadd.f32 %v575_v28, %v2511_v38  ;;  %v578_v28 = vmul.f32 %v2773_v15, %v2505_v2 }
 0x272   :  { %v649_v19 = vadd.f32 %v648_v29, %v2508_v60 }
 0x273   :  { %v1844_v8 = vpop.eup %1843  ;;  %v1727_v34 = vmul.f32 -1.442695, %v655_v24 }
 0x274   :  { %v662_v41 = vadd.f32 1.0, %v1844_v8 }
 0x275   :  { %v1846_v32 = vpop.eup %1845  ;;  %1849 = vpow2.f32 %v1727_v34 }
 0x276   :  { %1851 = vrcp.f32 %v662_v41  ;;  %v1848_v9 = vpop.eup %1847  ;;  %v2789_v10 = vadd.f32 1.0, %v1846_v32  ;;  %v675_v24 = vand.u32 2147483648, %v662_v41  ;;  %v673_v34 = vand.u32 2147483647, %v662_v41 }
 0x277   :  { %v705_v5 = vmul.f32 %v1848_v9, %v2784_v21  ;;  %vm669_vm2 = vweird.f32 %v662_v41  ;;  %vm710_vm5 = vweird.f32 %v1848_v9 }
 0x278   :  { %1853 = vrcp.f32 %v2789_v10  ;;  %vm674_vm4 = vcmp.eq.f32.partialorder %v673_v34, 8.507059e+37  ;;  %vm2803_vm8 = vmor %vm709_vm6, %vm710_vm5  ;;  %vm724_vm14 = vweird.f32 %v2789_v10 }
 0x279   :  { %v706_v20 = vsub.f32 1.0, %v705_v5  ;;  %v676_v5 = vor.u32 1.1754944e-38, %v675_v24 }
 0x27b   :  { %v1850_v11 = vpop.eup %1849  ;;  %v707_v30 = vmul.f32 %v1848_v9, %v706_v20  ;;  %v715_v20 = vand.u32 2147483648, %v2784_v21 }
 0x27c   :  { %v1852_v0 = vpop.eup %1851  ;;  %v663_v12 = vadd.f32 1.0, %v1850_v11 }
 0x27d   :  { %v665_v13 = vmul.f32 %v1852_v0, %v662_v41  ;;  %vm670_vm1 = vweird.f32 %v1852_v0  ;;  %v708_v4 = vadd.f32 %v1848_v9, %v707_v30  ;;  %v713_v41 = vand.u32 2147483647, %v2784_v21 }
 0x27e   :  { %1855 = vrcp.f32 %v663_v12  ;;  %v2793_v25 = vpop.eup %1853  ;;  %vm671_vm3 = vmor %vm669_vm2, %vm670_vm1  ;;  %vm684_vm9 = vweird.f32 %v663_v12  ;;  %v716_v21 = vor.u32 1.1754944e-38, %v715_v20 }
 0x27f   :  { %v666_v16 = vsub.f32 1.0, %v665_v13  ;;  %v720_v32 = vmul.f32 %v2793_v25, %v2789_v10  ;;  %vm714_vm11 = vcmp.eq.f32.partialorder %v713_v41, 8.507059e+37  ;;  %vm725_vm13 = vweird.f32 %v2793_v25 }
 0x280   :  { %vm726_vm15 = vmor %vm724_vm14, %vm725_vm13 }
 0x281   :  { %v667_v8 = vmul.f32 %v1852_v0, %v666_v16  ;;  %v721_v1 = vsub.f32 1.0, %v720_v32 }
 0x283   :  { %v668_v26 = vadd.f32 %v1852_v0, %v667_v8  ;;  %v690_v8 = vand.u32 2147483648, %v663_v12  ;;  %v722_v29 = vmul.f32 %v2793_v25, %v721_v1  ;;  %v730_v1 = vand.u32 2147483648, %v2789_v10 }
 0x284   :  { %v1856_v11 = vpop.eup %1855 }
 0x285   :  { %v672_v6 = vsel %vm671_vm3, %v1852_v0, %v668_v26  ;;  %v680_v13 = vmul.f32 %v1856_v11, %v663_v12  ;;  %vm685_vm7 = vweird.f32 %v1856_v11  ;;  %v688_v26 = vand.u32 2147483647, %v663_v12 }
 0x286   :  { %v677_v16 = vsel %vm674_vm4, %v676_v5, %v672_v6  ;;  %v651_v6 = vpop.f32.mrf.mxu1  ;;  %vm686_vm10 = vmor %vm684_vm9, %vm685_vm7  ;;  %v723_v15 = vadd.f32 %v2793_v25, %v722_v29  ;;  %v2869_v29 = vld [vmem:[#allocation5 + $0x70] sm:$0xff] }
 0x287   :  { %v681_v37 = vsub.f32 1.0, %v680_v13  ;;  %v734_v51 = vmul.f32 %v677_v16, %v649_v19  ;;  %v712_v19 = vsel %vm2803_vm8, %v1848_v9, %v708_v4  ;;  %v652_v32 = vadd.f32 %v651_v6, %v2508_v60  ;;  %v2859_v6 = vld [vmem:[#allocation5 + $0xa0] sm:$0xff] }
 0x288   :  { %vm689_vm12 = vcmp.eq.f32.partialorder %v688_v26, 8.507059e+37  ;;  %v584_v4 = vadd.f32 %v578_v28, %v2511_v38  ;;  %v728_v16 = vand.u32 2147483647, %v2789_v10  ;;  %v727_v41 = vsel %vm726_vm15, %v2793_v25, %v723_v15  ;;  %v3367_v15 = vld [vmem:[#allocation17_spill] sm:$0xff] }
 0x289   :  { %v682_v24 = vmul.f32 %v1856_v11, %v681_v37  ;;  %v736_v30 = vadd.f32 %v734_v51, %v581_v49  ;;  %v691_v37 = vor.u32 1.1754944e-38, %v690_v8  ;;  %v717_v49 = vsel %vm714_vm11, %v716_v21, %v712_v19  ;;  %v2864_v19 = vld [vmem:[#allocation5 + $0x88] sm:$0xff] }
 0x28a   :  { %v740_v12 = vsub.f32 1.0, %v717_v49  ;;  %v744_v8 = vmul.f32 %v717_v49, %v2631_v23  ;;  %vm729_vm0 = vcmp.eq.f32.partialorder %v728_v16, 8.507059e+37  ;;  %v3361_v21 = vld [vmem:[#allocation23_spill] sm:$0xff]  ;;  %v3372_v16 = vld [vmem:[#allocation18_spill] sm:$0xff] }
 0x28b   :  { %v683_v34 = vadd.f32 %v1856_v11, %v682_v24  ;;  %1857 = vtanh.f32 %v736_v30  ;;  %v731_v24 = vor.u32 1.1754944e-38, %v730_v1  ;;  %v2884_v49 = vld [vmem:[#allocation5 + $0x28] sm:$0xff]  ;;  %v3369_v1 = vld [vmem:[#allocation16_spill] sm:$0xff] }
 0x28c   :  { %3365 = vst [vmem:[#allocation32_spill] sm:$0xff] %v2884_v49 }
 0x28d   :  { %v687_v5 = vsel %vm686_vm10, %v1856_v11, %v683_v34  ;;  %v732_v0 = vsel %vm729_vm0, %v731_v24, %v727_v41  ;;  %v2874_v34 = vld [vmem:[#allocation5 + $0x58] sm:$0xff] }
 0x28e   :  { %v692_v13 = vsel %vm689_vm12, %v691_v37, %v687_v5  ;;  %v741_v10 = vsub.f32 1.0, %v732_v0  ;;  %v745_v30 = vmul.f32 %v732_v0, %v2658_v40  ;;  %v2854_v40 = vld [vmem:[#allocation5 + $0xb8] sm:$0xff]  ;;  %3360 = vst [vmem:[#allocation21_spill] sm:$0xff] %v2874_v34  ;;  %v2879_v37 = vld [vmem:[#allocation5 + $0x40] sm:$0xff] }
 0x28f   :  { %v735_v9 = vmul.f32 %v692_v13, %v652_v32  ;;  %3362 = vst [vmem:[#allocation20_spill] sm:$0xff] %v2879_v37  ;;  %v3363_v32 = vld [vmem:[#allocation15_spill] sm:$0xff]  ;;  %v3364_v5 = vld [vmem:[#allocation14_spill] sm:$0xff]  ;;  %v3366_v13 = vld [vmem:[#allocation24_spill] sm:$0xff] }
 0x291   :  { %v1858_v20 = vpop.eup %1857  ;;  %v737_v11 = vadd.f32 %v735_v9, %v584_v4  ;;  %v2889_v4 = vld [vmem:[#allocation5 + $0x10] sm:$0xff]  ;;  %v3370_v9 = vld [vmem:[#allocation25_spill] sm:$0xff] }
 0x292   :  { %v742_v51 = vmul.f32 %v1858_v20, %v740_v12  ;;  %3368 = vst [vmem:[#allocation33_spill] sm:$0xff] %v2889_v4  ;;  %v3371_v12 = vld [vmem:[#allocation19_spill] sm:$0xff]  ;;  %v750_v20 = vpop.permute.xlu0 %749 }
 0x293   :  { %1859 = vtanh.f32 %v737_v11  ;;  %v3373_v11 = vld [vmem:[#allocation28_spill] sm:$0xff] }
 0x294   :  { %v2821_v26 = vadd.f32 %v744_v8, %v742_v51  ;;  %v756_v51 = vmul.f32 %v750_v20, %v3373_v11  ;;  %v3374_v8 = vld [vmem:[#allocation29_spill] sm:$0xff] }
 0x295   :  { %v757_v41 = vmul.f32 %v750_v20, %v3374_v8 }
 0x296   :  { %784 = vmatmul.f32.vlgmr.msra.gmra.mxu2 %v2821_v26  ;;  %807 = vmatmul.f32.vlgmr.msra.gmra.mxu3 %v2821_v26 }
 0x297   :  { %830 = vmatmul.f32.vlgmr.msrb.gmra.mxu0 %v2821_v26  ;;  %1180 = vmatpush.msra.mxu2 %v2636_v7 }
 0x298   :  { %1317 = vmatpush.msra.mxu3 %v2639_v27  ;;  %1340 = vmatpush.msrb.mxu0 %v2642_v56 }
 0x299   :  { %v1860_v23 = vpop.eup %1859  ;;  %1181 = vmatpush.msra.mxu2 %v2645_v31 }
 0x29a   :  { %v743_v25 = vmul.f32 %v1860_v23, %v741_v10  ;;  %1318 = vmatpush.msra.mxu3 %v2649_v33  ;;  %1341 = vmatpush.msrb.mxu0 %v2652_v50  ;;  %v3375_v10 = vld [vmem:[#allocation30_spill] sm:$0xff] }
 0x29b   :  { %1182 = vmatpush.msra.mxu2 %v2655_v22  ;;  %v762_v23 = vadd.f32 %v756_v51, %v3375_v10 }
 0x29c   :  { %v2834_v28 = vadd.f32 %v745_v30, %v743_v25  ;;  %1319 = vmatpush.msra.mxu3 %v2660_v54  ;;  %1342 = vmatpush.msrb.mxu0 %v2663_v18  ;;  %v3376_v25 = vld [vmem:[#allocation26_spill] sm:$0xff] }
 0x29d   :  { %1183 = vmatpush.msra.mxu2 %v2666_v62 }
 0x29e   :  { %787 = vmatmul.f32.gmra.mxu2 %v2834_v28  ;;  %810 = vmatmul.f32.gmra.mxu3 %v2834_v28 }
 0x29f   :  { %833 = vmatmul.f32.gmra.mxu0 %v2834_v28  ;;  %1184 = vmatpush.msra.mxu2 %v2672_v44 }
 0x2a0   :  { %1320 = vmatpush.msra.mxu3 %v2675_v61  ;;  %1343 = vmatpush.msrb.mxu0 %v2678_v45 }
 0x2a1   :  { %1185 = vmatpush.msra.mxu2 %v2681_v17 }
 0x2a2   :  { %1321 = vmatpush.msra.mxu3 %v2684_v55  ;;  %1344 = vmatpush.msrb.mxu0 %v2687_v52 }
 0x2a3   :  { %1186 = vmatpush.msra.mxu2 %v2690_v53 }
 0x2a4   :  { %1322 = vmatpush.msra.mxu3 %v2693_v43  ;;  %1345 = vmatpush.msrb.mxu0 %v2696_v63 }
 0x2a5   :  { %1187 = vmatpush.msra.mxu2 %v2699_v36 }
 0x2a6   :  { %1323 = vmatpush.msra.mxu3 %v2702_v42  ;;  %1346 = vmatpush.msrb.mxu0 %v2705_v35 }
 0x2a7   :  { %1188 = vmatpush.msra.mxu2 %v2854_v40 }
 0x2a8   :  { %1324 = vmatpush.msra.mxu3 %v2709_v59  ;;  %1347 = vmatpush.msrb.mxu0 %v2712_v57 }
 0x2a9   :  { %1189 = vmatpush.msra.mxu2 %v2859_v6 }
 0x2aa   :  { %1325 = vmatpush.msra.mxu3 %v2716_v14  ;;  %1348 = vmatpush.msrb.mxu0 %v2719_v39 }
 0x2ab   :  { %1190 = vmatpush.msra.mxu2 %v2864_v19 }
 0x2ac   :  { %1326 = vmatpush.msra.mxu3 %v2723_v46  ;;  %1349 = vmatpush.msrb.mxu0 %v2726_v58 }
 0x2ad   :  { %1191 = vmatpush.msra.mxu2 %v2869_v29 }
 0x2ae   :  { %1327 = vmatpush.msra.mxu3 %v2730_v47  ;;  %1350 = vmatpush.msrb.mxu0 %v2733_v3 }
 0x2af   :  { %1192 = vmatpush.msra.mxu2 %v2874_v34 }
 0x2b0   :  { %1328 = vmatpush.msra.mxu3 %v2737_v48  ;;  %1351 = vmatpush.msrb.mxu0 %v3361_v21 }
 0x2b1   :  { %1193 = vmatpush.msra.mxu2 %v2879_v37 }
 0x2b2   :  { %1329 = vmatpush.msra.mxu3 %v3363_v32  ;;  %1352 = vmatpush.msrb.mxu0 %v3364_v5 }
 0x2b3   :  { %1194 = vmatpush.msra.mxu2 %v2884_v49 }
 0x2b4   :  { %1330 = vmatpush.msra.mxu3 %v3366_v13  ;;  %1353 = vmatpush.msrb.mxu0 %v3367_v15 }
 0x2b5   :  { %1195 = vmatpush.msra.mxu2 %v2889_v4  ;;  %v3377_v4 = vld [vmem:[#allocation31_spill] sm:$0xff] }
 0x2b6   :  { %1331 = vmatpush.msra.mxu3 %v3369_v1  ;;  %1354 = vmatpush.msrb.mxu0 %v3370_v9  ;;  %v763_v15 = vadd.f32 %v757_v41, %v3377_v4  ;;  %v3378_v1 = vld [vmem:[#allocation27_spill] sm:$0xff]  ;;  %v2902_v9 = vpop.permute.xlu1 %753 }
 0x2b7   :  { %v760_v5 = vmul.f32 %v2902_v9, %v3374_v8 }
 0x2b8   :  { %1332 = vmatpush.msra.mxu3 %v3371_v12  ;;  %1355 = vmatpush.msrb.mxu0 %v3372_v16  ;;  %v759_v16 = vmul.f32 %v2902_v9, %v3373_v11 }
 0x2b9   :  { %v766_v21 = vadd.f32 %v760_v5, %v3377_v4 }
 0x2ba   :  { %v765_v41 = vadd.f32 %v759_v16, %v3375_v10 }
 0x319   :  { %v785_v24 = vpop.f32.mrf.mxu2  ;;  %v808_v0 = vpop.f32.mrf.mxu3 }
 0x31a   :  { %v786_v30 = vadd.f32 %v785_v24, %v3376_v25  ;;  %v809_v13 = vadd.f32 %v808_v0, %v3378_v1 }
 0x31c   :  { %v837_v12 = vadd.f32 %v786_v30, %v762_v23  ;;  %v877_v49 = vadd.f32 %v809_v13, %v763_v15 }
 0x31e   :  { %v1730_v32 = vmul.f32 -1.442695, %v837_v12  ;;  %v1732_v37 = vmul.f32 -1.442695, %v877_v49 }
 0x320   :  { %1861 = vpow2.f32 %v1730_v32 }
 0x321   :  { %1863 = vpow2.f32 %v1732_v37  ;;  %v788_v51 = vpop.f32.mrf.mxu2  ;;  %v811_v24 = vpop.f32.mrf.mxu3 }
 0x322   :  { %v789_v0 = vadd.f32 %v788_v51, %v3376_v25  ;;  %v812_v13 = vadd.f32 %v811_v24, %v3378_v1 }
 0x324   :  { %v838_v15 = vadd.f32 %v789_v0, %v765_v41  ;;  %v878_v23 = vadd.f32 %v812_v13, %v766_v21  ;;  %v831_v41 = vpop.f32.mrf.mxu0 }
 0x326   :  { %v1862_v30 = vpop.eup %1861  ;;  %v1731_v11 = vmul.f32 -1.442695, %v838_v15  ;;  %v1733_v12 = vmul.f32 -1.442695, %v878_v23  ;;  %v758_v23 = vmul.f32 %v750_v20, %v2505_v2 }
 0x327   :  { %v1864_v48 = vpop.eup %1863  ;;  %v845_v8 = vadd.f32 1.0, %v1862_v30 }
 0x328   :  { %v885_v49 = vadd.f32 1.0, %v1864_v48  ;;  %1865 = vpow2.f32 %v1731_v11  ;;  %v764_v34 = vadd.f32 %v758_v23, %v2511_v38 }
 0x329   :  { %1867 = vrcp.f32 %v845_v8  ;;  %v858_v0 = vand.u32 2147483648, %v845_v8  ;;  %v856_v48 = vand.u32 2147483647, %v845_v8  ;;  %vm852_vm2 = vweird.f32 %v845_v8 }
 0x32a   :  { %1869 = vrcp.f32 %v885_v49  ;;  %vm892_vm6 = vweird.f32 %v885_v49 }
 0x32b   :  { %1871 = vpow2.f32 %v1733_v12  ;;  %vm857_vm4 = vcmp.eq.f32.partialorder %v856_v48, 8.507059e+37 }
 0x32c   :  { %v834_v23 = vpop.f32.mrf.mxu0 }
 0x32e   :  { %v1866_v37 = vpop.eup %1865 }
 0x32f   :  { %v1868_v32 = vpop.eup %1867  ;;  %v846_v16 = vadd.f32 1.0, %v1866_v37  ;;  %v859_v37 = vor.u32 1.1754944e-38, %v858_v0 }
 0x330   :  { %v1870_v51 = vpop.eup %1869  ;;  %v848_v25 = vmul.f32 %v1868_v32, %v845_v8  ;;  %vm853_vm1 = vweird.f32 %v1868_v32 }
 0x331   :  { %v1872_v5 = vpop.eup %1871  ;;  %v888_v4 = vmul.f32 %v1870_v51, %v885_v49  ;;  %1873 = vrcp.f32 %v846_v16  ;;  %vm854_vm3 = vmor %vm852_vm2, %vm853_vm1  ;;  %vm893_vm5 = vweird.f32 %v1870_v51  ;;  %v873_v20 = vand.u32 2147483648, %v846_v16 }
 0x332   :  { %v849_v24 = vsub.f32 1.0, %v848_v25  ;;  %v2912_v21 = vadd.f32 1.0, %v1872_v5  ;;  %v832_v25 = vadd.f32 %v831_v41, %v2508_v60  ;;  %v871_v41 = vand.u32 2147483647, %v846_v16  ;;  %vm2919_vm8 = vmor %vm892_vm6, %vm893_vm5 }
 0x333   :  { %v889_v13 = vsub.f32 1.0, %v888_v4  ;;  %vm867_vm9 = vweird.f32 %v846_v16 }
 0x334   :  { %v850_v15 = vmul.f32 %v1868_v32, %v849_v24  ;;  %1875 = vrcp.f32 %v2912_v21  ;;  %vm872_vm12 = vcmp.eq.f32.partialorder %v871_v41, 8.507059e+37  ;;  %vm907_vm14 = vweird.f32 %v2912_v21 }
 0x335   :  { %v890_v11 = vmul.f32 %v1870_v51, %v889_v13  ;;  %v898_v13 = vand.u32 2147483648, %v885_v49 }
 0x336   :  { %v851_v30 = vadd.f32 %v1868_v32, %v850_v15  ;;  %v896_v15 = vand.u32 2147483647, %v885_v49 }
 0x337   :  { %v1874_v12 = vpop.eup %1873  ;;  %v891_v4 = vadd.f32 %v1870_v51, %v890_v11  ;;  %v761_v11 = vmul.f32 %v2902_v9, %v2505_v2 }
 0x338   :  { %v855_v5 = vsel %vm854_vm3, %v1868_v32, %v851_v30  ;;  %v863_v1 = vmul.f32 %v1874_v12, %v846_v16  ;;  %vm868_vm7 = vweird.f32 %v1874_v12  ;;  %vm897_vm11 = vcmp.eq.f32.partialorder %v896_v15, 8.507059e+37 }
 0x339   :  { %v860_v10 = vsel %vm857_vm4, %v859_v37, %v855_v5  ;;  %v899_v37 = vor.u32 1.1754944e-38, %v898_v13  ;;  %vm869_vm10 = vmor %vm867_vm9, %vm868_vm7  ;;  %v911_v13 = vand.u32 2147483647, %v2912_v21 }
 0x33a   :  { %v1876_v24 = vpop.eup %1875  ;;  %v864_v3 = vsub.f32 1.0, %v863_v1  ;;  %v917_v47 = vmul.f32 %v860_v10, %v832_v25  ;;  %v895_v10 = vsel %vm2919_vm8, %v1870_v51, %v891_v4  ;;  %v835_v25 = vadd.f32 %v834_v23, %v2508_v60 }
 0x33b   :  { %v903_v8 = vmul.f32 %v1876_v24, %v2912_v21  ;;  %vm908_vm13 = vweird.f32 %v1876_v24  ;;  %v913_v51 = vand.u32 2147483648, %v2912_v21  ;;  %vm912_vm0 = vcmp.eq.f32.partialorder %v911_v13, 8.507059e+37 }
 0x33c   :  { %v865_v0 = vmul.f32 %v1874_v12, %v864_v3  ;;  %v919_v48 = vadd.f32 %v917_v47, %v764_v34  ;;  %v874_v3 = vor.u32 1.1754944e-38, %v873_v20  ;;  %v900_v47 = vsel %vm897_vm11, %v899_v37, %v895_v10  ;;  %vm909_vm15 = vmor %vm907_vm14, %vm908_vm13  ;;  %v3401_v37 = vld [vmem:[#allocation31_spill] sm:$0xff] }
 0x33d   :  { %v904_v1 = vsub.f32 1.0, %v903_v8  ;;  %v767_v8 = vadd.f32 %v761_v11, %v2511_v38  ;;  %v923_v16 = vsub.f32 1.0, %v900_v47  ;;  %v914_v32 = vor.u32 1.1754944e-38, %v913_v51 }
 0x33e   :  { %v866_v30 = vadd.f32 %v1874_v12, %v865_v0  ;;  %1877 = vtanh.f32 %v919_v48 }
 0x33f   :  { %v905_v49 = vmul.f32 %v1876_v24, %v904_v1 }
 0x340   :  { %v870_v5 = vsel %vm869_vm10, %v1874_v12, %v866_v30  ;;  %v927_v12 = vmul.f32 %v900_v47, %v2821_v26 }
 0x341   :  { %v875_v34 = vsel %vm872_vm12, %v874_v3, %v870_v5  ;;  %v906_v9 = vadd.f32 %v1876_v24, %v905_v49  ;;  %v3402_v49 = vld [vmem:[#allocation27_spill] sm:$0xff] }
 0x342   :  { %v918_v4 = vmul.f32 %v875_v34, %v835_v25 }
 0x343   :  { %v910_v41 = vsel %vm909_vm15, %v1876_v24, %v906_v9 }
 0x344   :  { %v1878_v20 = vpop.eup %1877  ;;  %v920_v15 = vadd.f32 %v918_v4, %v767_v8  ;;  %v915_v11 = vsel %vm912_vm0, %v914_v32, %v910_v41 }
 0x345   :  { %v925_v0 = vmul.f32 %v1878_v20, %v923_v16  ;;  %v924_v21 = vsub.f32 1.0, %v915_v11  ;;  %v928_v23 = vmul.f32 %v915_v11, %v2834_v28 }
 0x346   :  { %1879 = vtanh.f32 %v920_v15 }
 0x347   :  { %v2933_v48 = vadd.f32 %v927_v12, %v925_v0 }
 0x349   :  { %967 = vmatmul.f32.vlgmr.msrb.gmra.mxu1 %v2933_v48  ;;  %990 = vmatmul.f32.vlgmr.msrb.gmra.mxu2 %v2933_v48 }
 0x34a   :  { %1013 = vmatmul.f32.vlgmr.msrb.gmra.mxu3 %v2933_v48  ;;  %1363 = vmatpush.msrb.mxu1 %v2636_v7  ;;  %v3381_v7 = vld [vmem:[#allocation22_spill] sm:$0xff] }
 0x34b   :  { %1500 = vmatpush.msrb.mxu2 %v2639_v27  ;;  %1523 = vmatpush.msrb.mxu3 %v2642_v56  ;;  %v3382_v27 = vld [vmem:[#allocation13_spill] sm:$0xff] }
 0x34c   :  { %v1880_v26 = vpop.eup %1879  ;;  %1364 = vmatpush.msrb.mxu1 %v2645_v31  ;;  %v3383_v56 = vld [vmem:[#allocation21_spill] sm:$0xff]  ;;  %v3384_v31 = vld [vmem:[#allocation12_spill] sm:$0xff] }
 0x34d   :  { %v926_v24 = vmul.f32 %v1880_v26, %v924_v21  ;;  %1501 = vmatpush.msrb.mxu2 %v2649_v33  ;;  %1524 = vmatpush.msrb.mxu3 %v2652_v50  ;;  %v3385_v33 = vld [vmem:[#allocation23_spill] sm:$0xff]  ;;  %v3386_v50 = vld [vmem:[#allocation20_spill] sm:$0xff] }
 0x34e   :  { %1365 = vmatpush.msrb.mxu1 %v2655_v22  ;;  %v3387_v22 = vld [vmem:[#allocation15_spill] sm:$0xff] }
 0x34f   :  { %v2946_v1 = vadd.f32 %v928_v23, %v926_v24  ;;  %1502 = vmatpush.msrb.mxu2 %v2660_v54  ;;  %1525 = vmatpush.msrb.mxu3 %v2663_v18  ;;  %v3388_v54 = vld [vmem:[#allocation14_spill] sm:$0xff]  ;;  %v3389_v18 = vld [vmem:[#allocation32_spill] sm:$0xff] }
 0x350   :  { %1366 = vmatpush.msrb.mxu1 %v2666_v62  ;;  %v3390_v62 = vld [vmem:[#allocation24_spill] sm:$0xff] }
 0x351   :  { %970 = vmatmul.f32.gmra.mxu1 %v2946_v1  ;;  %993 = vmatmul.f32.gmra.mxu2 %v2946_v1 }
 0x352   :  { %1016 = vmatmul.f32.gmra.mxu3 %v2946_v1  ;;  %1367 = vmatpush.msrb.mxu1 %v2672_v44  ;;  %v3391_v44 = vld [vmem:[#allocation17_spill] sm:$0xff] }
 0x353   :  { %1503 = vmatpush.msrb.mxu2 %v2675_v61  ;;  %1526 = vmatpush.msrb.mxu3 %v2678_v45  ;;  %v3392_v61 = vld [vmem:[#allocation33_spill] sm:$0xff]  ;;  %v3393_v45 = vld [vmem:[#allocation16_spill] sm:$0xff] }
 0x354   :  { %1368 = vmatpush.msrb.mxu1 %v2681_v17  ;;  %v3394_v17 = vld [vmem:[#allocation25_spill] sm:$0xff] }
 0x355   :  { %1504 = vmatpush.msrb.mxu2 %v2684_v55  ;;  %1527 = vmatpush.msrb.mxu3 %v2687_v52  ;;  %v3395_v55 = vld [vmem:[#allocation19_spill] sm:$0xff]  ;;  %v3396_v52 = vld [vmem:[#allocation18_spill] sm:$0xff] }
 0x356   :  { %1369 = vmatpush.msrb.mxu1 %v2690_v53  ;;  %v933_v53 = vpop.permute.xlu2 %932 }
 0x357   :  { %1505 = vmatpush.msrb.mxu2 %v2693_v43  ;;  %1528 = vmatpush.msrb.mxu3 %v2696_v63  ;;  %v3397_v43 = vld [vmem:[#allocation28_spill] sm:$0xff] }
 0x358   :  { %1370 = vmatpush.msrb.mxu1 %v2699_v36  ;;  %v939_v63 = vmul.f32 %v933_v53, %v3397_v43 }
 0x359   :  { %1506 = vmatpush.msrb.mxu2 %v2702_v42  ;;  %1529 = vmatpush.msrb.mxu3 %v2705_v35  ;;  %v3398_v42 = vld [vmem:[#allocation30_spill] sm:$0xff] }
 0x35a   :  { %1371 = vmatpush.msrb.mxu1 %v2854_v40  ;;  %v945_v35 = vadd.f32 %v939_v63, %v3398_v42 }
 0x35b   :  { %1507 = vmatpush.msrb.mxu2 %v2709_v59  ;;  %1530 = vmatpush.msrb.mxu3 %v2712_v57  ;;  %v3399_v59 = vld [vmem:[#allocation26_spill] sm:$0xff] }
 0x35c   :  { %1372 = vmatpush.msrb.mxu1 %v2859_v6 }
 0x35d   :  { %1508 = vmatpush.msrb.mxu2 %v2716_v14  ;;  %1531 = vmatpush.msrb.mxu3 %v2719_v39  ;;  %v2995_v14 = vpop.permute.xlu1 %936  ;;  %v3400_v39 = vld [vmem:[#allocation29_spill] sm:$0xff] }
 0x35e   :  { %1373 = vmatpush.msrb.mxu1 %v2864_v19  ;;  %v942_v28 = vmul.f32 %v2995_v14, %v3397_v43  ;;  %v943_v8 = vmul.f32 %v2995_v14, %v3400_v39 }
 0x35f   :  { %1509 = vmatpush.msrb.mxu2 %v2723_v46  ;;  %1532 = vmatpush.msrb.mxu3 %v2726_v58  ;;  %v940_v46 = vmul.f32 %v933_v53, %v3400_v39 }
 0x360   :  { %1374 = vmatpush.msrb.mxu1 %v2869_v29  ;;  %v948_v34 = vadd.f32 %v942_v28, %v3398_v42  ;;  %v949_v0 = vadd.f32 %v943_v8, %v3401_v37 }
 0x361   :  { %1510 = vmatpush.msrb.mxu2 %v3381_v7  ;;  %1533 = vmatpush.msrb.mxu3 %v3382_v27  ;;  %v946_v3 = vadd.f32 %v940_v46, %v3401_v37 }
 0x362   :  { %1375 = vmatpush.msrb.mxu1 %v3383_v56 }
 0x363   :  { %1511 = vmatpush.msrb.mxu2 %v3384_v31  ;;  %1534 = vmatpush.msrb.mxu3 %v3385_v33 }
 0x364   :  { %1376 = vmatpush.msrb.mxu1 %v3386_v50 }
 0x365   :  { %1512 = vmatpush.msrb.mxu2 %v3387_v22  ;;  %1535 = vmatpush.msrb.mxu3 %v3388_v54 }
 0x366   :  { %1377 = vmatpush.msrb.mxu1 %v3389_v18 }
 0x367   :  { %1513 = vmatpush.msrb.mxu2 %v3390_v62  ;;  %1536 = vmatpush.msrb.mxu3 %v3391_v44 }
 0x368   :  { %1378 = vmatpush.msrb.mxu1 %v3392_v61 }
 0x369   :  { %1514 = vmatpush.msrb.mxu2 %v3393_v45  ;;  %1537 = vmatpush.msrb.mxu3 %v3394_v17  ;;  %v941_v45 = vmul.f32 %v933_v53, %v2505_v2 }
 0x36b   :  { %1515 = vmatpush.msrb.mxu2 %v3395_v55  ;;  %1538 = vmatpush.msrb.mxu3 %v3396_v52  ;;  %v947_v28 = vadd.f32 %v941_v45, %v2511_v38 }
 0x3c6   :  { %v968_v36 = vpop.f32.mrf.mxu1 }
 0x3c7   :  { %v969_v57 = vadd.f32 %v968_v36, %v3399_v59 }
 0x3c9   :  { %v1020_v58 = vadd.f32 %v969_v57, %v945_v35 }
 0x3cb   :  { %v1734_v10 = vmul.f32 -1.442695, %v1020_v58 }
 0x3cc   :  { %v991_v30 = vpop.f32.mrf.mxu2 }
 0x3cd   :  { %1881 = vpow2.f32 %v1734_v10  ;;  %v992_v25 = vadd.f32 %v991_v30, %v3402_v49  ;;  %v1014_v27 = vpop.f32.mrf.mxu3 }
 0x3ce   :  { %v971_v5 = vpop.f32.mrf.mxu1  ;;  %v1015_v36 = vadd.f32 %v1014_v27, %v2508_v60 }
 0x3cf   :  { %v1060_v47 = vadd.f32 %v992_v25, %v946_v3  ;;  %v972_v9 = vadd.f32 %v971_v5, %v3399_v59 }
 0x3d1   :  { %v1736_v51 = vmul.f32 -1.442695, %v1060_v47  ;;  %v1021_v4 = vadd.f32 %v972_v9, %v948_v34 }
 0x3d3   :  { %v1882_v16 = vpop.eup %1881  ;;  %1883 = vpow2.f32 %v1736_v51  ;;  %v1735_v13 = vmul.f32 -1.442695, %v1021_v4 }
 0x3d4   :  { %v1028_v20 = vadd.f32 1.0, %v1882_v16  ;;  %v994_v15 = vpop.f32.mrf.mxu2 }
 0x3d5   :  { %1885 = vpow2.f32 %v1735_v13  ;;  %v995_v12 = vadd.f32 %v994_v15, %v3402_v49  ;;  %v1017_v8 = vpop.f32.mrf.mxu3  ;;  %v944_v13 = vmul.f32 %v2995_v14, %v2505_v2 }
 0x3d6   :  { %1887 = vrcp.f32 %v1028_v20  ;;  %v1041_v33 = vand.u32 2147483648, %v1028_v20  ;;  %v1039_v62 = vand.u32 2147483647, %v1028_v20  ;;  %vm1035_vm2 = vweird.f32 %v1028_v20 }
 0x3d7   :  { %v1061_v41 = vadd.f32 %v995_v12, %v949_v0 }
 0x3d8   :  { %v1042_v35 = vor.u32 1.1754944e-38, %v1041_v33  ;;  %vm1040_vm4 = vcmp.eq.f32.partialorder %v1039_v62, 8.507059e+37 }
 0x3d9   :  { %v1884_v32 = vpop.eup %1883  ;;  %v1737_v11 = vmul.f32 -1.442695, %v1061_v41  ;;  %v1018_v41 = vadd.f32 %v1017_v8, %v2508_v60 }
 0x3da   :  { %v1068_v21 = vadd.f32 1.0, %v1884_v32 }
 0x3db   :  { %v1886_v26 = vpop.eup %1885  ;;  %1889 = vpow2.f32 %v1737_v11 }
 0x3dc   :  { %v1888_v24 = vpop.eup %1887  ;;  %1891 = vrcp.f32 %v1068_v21  ;;  %v1029_v23 = vadd.f32 1.0, %v1886_v26  ;;  %v1081_v53 = vand.u32 2147483648, %v1068_v21  ;;  %vm1075_vm6 = vweird.f32 %v1068_v21 }
 0x3dd   :  { %v1031_v7 = vmul.f32 %v1888_v24, %v1028_v20  ;;  %vm1036_vm1 = vweird.f32 %v1888_v24  ;;  %v1079_v34 = vand.u32 2147483647, %v1068_v21 }
 0x3de   :  { %1893 = vrcp.f32 %v1029_v23  ;;  %vm1037_vm3 = vmor %vm1035_vm2, %vm1036_vm1  ;;  %v1054_v5 = vand.u32 2147483647, %v1029_v23  ;;  %v1056_v47 = vand.u32 2147483648, %v1029_v23  ;;  %vm1050_vm8 = vweird.f32 %v1029_v23 }
 0x3df   :  { %v1032_v31 = vsub.f32 1.0, %v1031_v7  ;;  %v1082_v20 = vor.u32 1.1754944e-38, %v1081_v53  ;;  %vm1080_vm11 = vcmp.eq.f32.partialorder %v1079_v34, 8.507059e+37  ;;  %v2012_v53 = vld [vmem:[#allocation5 + $0x130] sm:$0xff] }
 0x3e0   :  { %v1057_v32 = vor.u32 1.1754944e-38, %v1056_v47  ;;  %vm1055_vm12 = vcmp.eq.f32.partialorder %v1054_v5, 8.507059e+37  ;;  %v2016_v5 = vld [vmem:[#allocation5 + $0xd0] sm:$0xff] }
 0x3e1   :  { %v1890_v22 = vpop.eup %1889  ;;  %v1033_v54 = vmul.f32 %v1888_v24, %v1032_v31 }
 0x3e2   :  { %v1892_v44 = vpop.eup %1891  ;;  %v3009_v17 = vadd.f32 1.0, %v1890_v22 }
 0x3e3   :  { %v1071_v55 = vmul.f32 %v1892_v44, %v1068_v21  ;;  %v1034_v52 = vadd.f32 %v1888_v24, %v1033_v54  ;;  %vm1076_vm5 = vweird.f32 %v1892_v44 }
 0x3e4   :  { %v1894_v63 = vpop.eup %1893  ;;  %1895 = vrcp.f32 %v3009_v17  ;;  %vm1077_vm9 = vmor %vm1075_vm6, %vm1076_vm5  ;;  %v1096_v27 = vand.u32 2147483648, %v3009_v17  ;;  %v1094_v33 = vand.u32 2147483647, %v3009_v17  ;;  %vm1090_vm14 = vweird.f32 %v3009_v17 }
 0x3e5   :  { %v1072_v57 = vsub.f32 1.0, %v1071_v55  ;;  %v1038_v46 = vsel %vm1037_vm3, %v1888_v24, %v1034_v52  ;;  %v1046_v58 = vmul.f32 %v1894_v63, %v1029_v23  ;;  %vm1051_vm7 = vweird.f32 %v1894_v63 }
 0x3e6   :  { %v1043_v10 = vsel %vm1040_vm4, %v1042_v35, %v1038_v46  ;;  %vm1052_vm10 = vmor %vm1050_vm8, %vm1051_vm7  ;;  %v950_v24 = vadd.f32 %v944_v13, %v2511_v38  ;;  %v1097_v52 = vor.u32 1.1754944e-38, %v1096_v27  ;;  %vm1095_vm0 = vcmp.eq.f32.partialorder %v1094_v33, 8.507059e+37  ;;  %v2009_v35 = vld [vmem:[#allocation5 + $0x178] sm:$0xff]  ;;  %v2010_v46 = vld [vmem:[#allocation5 + $0x160] sm:$0xff] }
 0x3e7   :  { %v1100_v30 = vmul.f32 %v1043_v10, %v1015_v36  ;;  %v1047_v3 = vsub.f32 1.0, %v1046_v58  ;;  %v1073_v25 = vmul.f32 %v1892_v44, %v1072_v57 }
 0x3e9   :  { %v1102_v9 = vadd.f32 %v1100_v30, %v947_v28  ;;  %v1048_v51 = vmul.f32 %v1894_v63, %v1047_v3  ;;  %v1074_v4 = vadd.f32 %v1892_v44, %v1073_v25  ;;  %v2011_v28 = vld [vmem:[#allocation5 + $0x148] sm:$0xff]  ;;  %v2013_v30 = vld [vmem:[#allocation5 + $0x118] sm:$0xff]  ;;  %v2014_v3 = vld [vmem:[#allocation5 + $0x100] sm:$0xff] }
 0x3ea   :  { %v1896_v16 = vpop.eup %1895  ;;  %v2015_v25 = vld [vmem:[#allocation5 + $0xe8] sm:$0xff] }
 0x3eb   :  { %1897 = vtanh.f32 %v1102_v9  ;;  %v1086_v15 = vmul.f32 %v1896_v16, %v3009_v17  ;;  %v1049_v0 = vadd.f32 %v1894_v63, %v1048_v51  ;;  %v1078_v12 = vsel %vm1077_vm9, %v1892_v44, %v1074_v4 }
 0x3ec   :  { %v1083_v26 = vsel %vm1080_vm11, %v1082_v20, %v1078_v12  ;;  %vm1091_vm13 = vweird.f32 %v1896_v16 }
 0x3ed   :  { %v1087_v11 = vsub.f32 1.0, %v1086_v15  ;;  %v1053_v21 = vsel %vm1052_vm10, %v1894_v63, %v1049_v0  ;;  %v1106_v31 = vsub.f32 1.0, %v1083_v26  ;;  %v1110_v45 = vmul.f32 %v1083_v26, %v2933_v48  ;;  %vm1092_vm15 = vmor %vm1090_vm14, %vm1091_vm13 }
 0x3ee   :  { %v1058_v14 = vsel %vm1055_vm12, %v1057_v32, %v1053_v21 }
 0x3ef   :  { %v1101_v23 = vmul.f32 %v1058_v14, %v1018_v41  ;;  %v1088_v7 = vmul.f32 %v1896_v16, %v1087_v11 }
 0x3f1   :  { %v1898_v22 = vpop.eup %1897  ;;  %v1103_v54 = vadd.f32 %v1101_v23, %v950_v24  ;;  %v1089_v62 = vadd.f32 %v1896_v16, %v1088_v7 }
 0x3f2   :  { %v1108_v44 = vmul.f32 %v1898_v22, %v1106_v31 }
 0x3f3   :  { %1899 = vtanh.f32 %v1103_v54  ;;  %v1093_v55 = vsel %vm1092_vm15, %v1896_v16, %v1089_v62 }
 0x3f4   :  { %v3023_v63 = vadd.f32 %v1110_v45, %v1108_v44  ;;  %v1098_v36 = vsel %vm1095_vm0, %v1097_v52, %v1093_v55 }
 0x3f5   :  { %v1107_v17 = vsub.f32 1.0, %v1098_v36  ;;  %v1111_v58 = vmul.f32 %v1098_v36, %v2946_v1  ;;  %v1116_v1 = vpop.permute.xlu2 %1115 }
 0x3f6   :  { %1150 = vmatmul.f32.vlgmr.msra.gmra.mxu0 %v3023_v63  ;;  %1173 = vmatmul.f32.vlgmr.msra.gmra.mxu1 %v3023_v63  ;;  %v1122_v47 = vmul.f32 %v1116_v1, %v3397_v43  ;;  %v1123_v34 = vmul.f32 %v1116_v1, %v3400_v39 }
 0x3f7   :  { %1196 = vmatmul.f32.vlgmr.msra.gmra.mxu2 %v3023_v63  ;;  %1546 = vmatpush.msra.mxu0 %v2009_v35 }
 0x3f9   :  { %v1900_v57 = vpop.eup %1899  ;;  %1547 = vmatpush.msra.mxu0 %v2010_v46 }
 0x3fa   :  { %v1109_v48 = vmul.f32 %v1900_v57, %v1107_v17 }
 0x3fb   :  { %1548 = vmatpush.msra.mxu0 %v2011_v28 }
 0x3fc   :  { %v3029_v10 = vadd.f32 %v1111_v58, %v1109_v48  ;;  %v1124_v48 = vmul.f32 %v1116_v1, %v2505_v2 }
 0x3fd   :  { %1549 = vmatpush.msra.mxu0 %v2012_v53 }
 0x3fe   :  { %1153 = vmatmul.f32.gmra.mxu0 %v3029_v10  ;;  %1176 = vmatmul.f32.gmra.mxu1 %v3029_v10 }
 0x3ff   :  { %1199 = vmatmul.f32.gmra.mxu2 %v3029_v10  ;;  %1550 = vmatpush.msra.mxu0 %v2013_v30 }
 0x401   :  { %1551 = vmatpush.msra.mxu0 %v2014_v3 }
 0x403   :  { %1552 = vmatpush.msra.mxu0 %v2015_v25 }
 0x405   :  { %1553 = vmatpush.msra.mxu0 %v2016_v5 }
 0x407   :  { %1554 = vmatpush.msra.mxu0 %v2854_v40 }
 0x409   :  { %1555 = vmatpush.msra.mxu0 %v2859_v6  ;;  %v1128_v6 = vadd.f32 %v1122_v47, %v3398_v42 }
 0x40b   :  { %1556 = vmatpush.msra.mxu0 %v2864_v19 }
 0x40d   :  { %1557 = vmatpush.msra.mxu0 %v2869_v29  ;;  %v1129_v29 = vadd.f32 %v1123_v34, %v3401_v37 }
 0x40f   :  { %1558 = vmatpush.msra.mxu0 %v3383_v56 }
 0x411   :  { %1559 = vmatpush.msra.mxu0 %v3386_v50  ;;  %v3048_v50 = vpop.permute.xlu0 %1119 }
 0x412   :  { %v1126_v51 = vmul.f32 %v3048_v50, %v3400_v39 }
 0x413   :  { %1560 = vmatpush.msra.mxu0 %v3389_v18 }
 0x414   :  { %v1132_v0 = vadd.f32 %v1126_v51, %v3401_v37 }
 0x415   :  { %1561 = vmatpush.msra.mxu0 %v3392_v61  ;;  %v1125_v61 = vmul.f32 %v3048_v50, %v3397_v43 }
 0x417   :  { %v1131_v15 = vadd.f32 %v1125_v61, %v3398_v42 }
 0x473   :  { %v1151_v40 = vpop.f32.mrf.mxu0  ;;  %v1174_v9 = vpop.f32.mrf.mxu1 }
 0x474   :  { %v1152_v19 = vadd.f32 %v1151_v40, %v3399_v59  ;;  %v1175_v56 = vadd.f32 %v1174_v9, %v3402_v49  ;;  %v1130_v40 = vadd.f32 %v1124_v48, %v2511_v38 }
 0x476   :  { %v1203_v18 = vadd.f32 %v1152_v19, %v1128_v6  ;;  %v1243_v8 = vadd.f32 %v1175_v56, %v1129_v29 }
 0x478   :  { %v1738_v4 = vmul.f32 -1.442695, %v1203_v18  ;;  %v1740_v16 = vmul.f32 -1.442695, %v1243_v8 }
 0x47a   :  { %1901 = vpow2.f32 %v1738_v4  ;;  %v1197_v36 = vpop.f32.mrf.mxu2  ;;  %v1127_v4 = vmul.f32 %v3048_v50, %v2505_v2 }
 0x47b   :  { %1903 = vpow2.f32 %v1740_v16  ;;  %v1154_v13 = vpop.f32.mrf.mxu0  ;;  %v1177_v20 = vpop.f32.mrf.mxu1  ;;  %v1198_v30 = vadd.f32 %v1197_v36, %v2508_v60 }
 0x47c   :  { %v1155_v12 = vadd.f32 %v1154_v13, %v3399_v59  ;;  %v1178_v41 = vadd.f32 %v1177_v20, %v3402_v49 }
 0x47e   :  { %v1204_v32 = vadd.f32 %v1155_v12, %v1131_v15  ;;  %v1244_v11 = vadd.f32 %v1178_v41, %v1132_v0 }
 0x480   :  { %v1902_v21 = vpop.eup %1901  ;;  %v1739_v26 = vmul.f32 -1.442695, %v1204_v32  ;;  %v1741_v23 = vmul.f32 -1.442695, %v1244_v11 }
 0x481   :  { %v1904_v24 = vpop.eup %1903  ;;  %v1211_v14 = vadd.f32 1.0, %v1902_v21 }
 0x482   :  { %v1251_v7 = vadd.f32 1.0, %v1904_v24  ;;  %1905 = vpow2.f32 %v1739_v26  ;;  %v1200_v13 = vpop.f32.mrf.mxu2  ;;  %v1133_v24 = vadd.f32 %v1127_v4, %v2511_v38 }
 0x483   :  { %1907 = vrcp.f32 %v1211_v14  ;;  %v1224_v35 = vand.u32 2147483648, %v1211_v14  ;;  %v1222_v57 = vand.u32 2147483647, %v1211_v14  ;;  %vm1218_vm2 = vweird.f32 %v1211_v14 }
 0x484   :  { %1909 = vrcp.f32 %v1251_v7  ;;  %v1264_v19 = vand.u32 2147483648, %v1251_v7  ;;  %vm1258_vm6 = vweird.f32 %v1251_v7  ;;  %v1262_v56 = vand.u32 2147483647, %v1251_v7 }
 0x485   :  { %1911 = vpow2.f32 %v1741_v23  ;;  %v1225_v53 = vor.u32 1.1754944e-38, %v1224_v35  ;;  %vm1223_vm4 = vcmp.eq.f32.partialorder %v1222_v57, 8.507059e+37  ;;  %v1201_v32 = vadd.f32 %v1200_v13, %v2508_v60 }
 0x486   :  { %v1265_v0 = vor.u32 1.1754944e-38, %v1264_v19  ;;  %vm1263_vm11 = vcmp.eq.f32.partialorder %v1262_v56, 8.507059e+37 }
 0x488   :  { %v1906_v27 = vpop.eup %1905 }
 0x489   :  { %v1908_v31 = vpop.eup %1907  ;;  %v1212_v33 = vadd.f32 1.0, %v1906_v27 }
 0x48a   :  { %v1910_v22 = vpop.eup %1909  ;;  %v1214_v54 = vmul.f32 %v1908_v31, %v1211_v14  ;;  %vm1219_vm1 = vweird.f32 %v1908_v31 }
 0x48b   :  { %v1912_v62 = vpop.eup %1911  ;;  %v1254_v44 = vmul.f32 %v1910_v22, %v1251_v7  ;;  %1913 = vrcp.f32 %v1212_v33  ;;  %vm1220_vm3 = vmor %vm1218_vm2, %vm1219_vm1  ;;  %vm1259_vm5 = vweird.f32 %v1910_v22  ;;  %v1239_v29 = vand.u32 2147483648, %v1212_v33 }
 0x48c   :  { %v1215_v45 = vsub.f32 1.0, %v1214_v54  ;;  %v3058_v55 = vadd.f32 1.0, %v1912_v62  ;;  %v1237_v61 = vand.u32 2147483647, %v1212_v33  ;;  %vm3065_vm8 = vmor %vm1258_vm6, %vm1259_vm5  ;;  %vm1233_vm9 = vweird.f32 %v1212_v33 }
 0x48d   :  { %v1255_v52 = vsub.f32 1.0, %v1254_v44  ;;  %v1240_v12 = vor.u32 1.1754944e-38, %v1239_v29 }
 0x48e   :  { %v1216_v17 = vmul.f32 %v1908_v31, %v1215_v45  ;;  %1915 = vrcp.f32 %v3058_v55  ;;  %vm1238_vm12 = vcmp.eq.f32.partialorder %v1237_v61, 8.507059e+37  ;;  %v1279_v23 = vand.u32 2147483648, %v3058_v55 }
 0x48f   :  { %v1256_v46 = vmul.f32 %v1910_v22, %v1255_v52  ;;  %vm1273_vm14 = vweird.f32 %v3058_v55  ;;  %v1277_v27 = vand.u32 2147483647, %v3058_v55 }
 0x490   :  { %v1217_v58 = vadd.f32 %v1908_v31, %v1216_v17  ;;  %v1280_v44 = vor.u32 1.1754944e-38, %v1279_v23 }
 0x491   :  { %v1914_v28 = vpop.eup %1913  ;;  %v1257_v47 = vadd.f32 %v1910_v22, %v1256_v46  ;;  %vm1278_vm0 = vcmp.eq.f32.partialorder %v1277_v27, 8.507059e+37 }
 0x492   :  { %v1221_v3 = vsel %vm1220_vm3, %v1908_v31, %v1217_v58  ;;  %v1229_v25 = vmul.f32 %v1914_v28, %v1212_v33  ;;  %vm1234_vm7 = vweird.f32 %v1914_v28 }
 0x493   :  { %v1226_v5 = vsel %vm1223_vm4, %v1225_v53, %v1221_v3  ;;  %v1261_v20 = vsel %vm3065_vm8, %v1910_v22, %v1257_v47  ;;  %vm1235_vm10 = vmor %vm1233_vm9, %vm1234_vm7  ;;  %v3093_v53 = vpop.permute.xlu2 %1302 }
 0x494   :  { %v1916_v34 = vpop.eup %1915  ;;  %v1283_v9 = vmul.f32 %v1226_v5, %v1198_v30  ;;  %v1230_v6 = vsub.f32 1.0, %v1229_v25  ;;  %v1266_v21 = vsel %vm1263_vm11, %v1265_v0, %v1261_v20  ;;  %v1309_v3 = vmul.f32 %v3093_v53, %v3400_v39 }
 0x495   :  { %v1269_v1 = vmul.f32 %v1916_v34, %v3058_v55  ;;  %vm1274_vm13 = vweird.f32 %v1916_v34  ;;  %v1289_v7 = vsub.f32 1.0, %v1266_v21  ;;  %v1293_v54 = vmul.f32 %v1266_v21, %v3023_v63  ;;  %v1299_v63 = vpop.permute.xlu1 %1298 }
 0x496   :  { %v1285_v18 = vadd.f32 %v1283_v9, %v1130_v40  ;;  %v1231_v8 = vmul.f32 %v1914_v28, %v1230_v6  ;;  %vm1275_vm15 = vmor %vm1273_vm14, %vm1274_vm13  ;;  %v1306_v46 = vmul.f32 %v1299_v63, %v3400_v39  ;;  %v1315_v6 = vadd.f32 %v1309_v3, %v3401_v37 }
 0x497   :  { %v1270_v16 = vsub.f32 1.0, %v1269_v1  ;;  %v1308_v1 = vmul.f32 %v3093_v53, %v3397_v43 }
 0x498   :  { %1917 = vtanh.f32 %v1285_v18  ;;  %v1232_v15 = vadd.f32 %v1914_v28, %v1231_v8  ;;  %v1312_v58 = vadd.f32 %v1306_v46, %v3401_v37 }
 0x499   :  { %v1271_v41 = vmul.f32 %v1916_v34, %v1270_v16  ;;  %v1314_v4 = vadd.f32 %v1308_v1, %v3398_v42 }
 0x49a   :  { %v1236_v11 = vsel %vm1235_vm10, %v1914_v28, %v1232_v15 }
 0x49b   :  { %v1241_v26 = vsel %vm1238_vm12, %v1240_v12, %v1236_v11  ;;  %v1272_v50 = vadd.f32 %v1916_v34, %v1271_v41 }
 0x49c   :  { %v1284_v14 = vmul.f32 %v1241_v26, %v1201_v32 }
 0x49d   :  { %v1276_v62 = vsel %vm1275_vm15, %v1916_v34, %v1272_v50 }
 0x49e   :  { %v1918_v31 = vpop.eup %1917  ;;  %v1286_v33 = vadd.f32 %v1284_v14, %v1133_v24  ;;  %v1281_v52 = vsel %vm1278_vm0, %v1280_v44, %v1276_v62  ;;  %v1307_v44 = vmul.f32 %v1299_v63, %v2505_v2 }
 0x49f   :  { %v1291_v22 = vmul.f32 %v1918_v31, %v1289_v7  ;;  %v1290_v55 = vsub.f32 1.0, %v1281_v52  ;;  %v1294_v17 = vmul.f32 %v1281_v52, %v3029_v10  ;;  %v1305_v10 = vmul.f32 %v1299_v63, %v3397_v43 }
 0x4a0   :  { %1919 = vtanh.f32 %v1286_v33 }
 0x4a1   :  { %v3079_v45 = vadd.f32 %v1293_v54, %v1291_v22  ;;  %v1311_v47 = vadd.f32 %v1305_v10, %v3398_v42  ;;  %v1313_v10 = vadd.f32 %v1307_v44, %v2511_v38 }
 0x4a3   :  { %1333 = vmatmul.f32.vlgmr.msra.gmra.mxu3 %v3079_v45  ;;  %1356 = vmatmul.f32.vlgmr.msrb.gmra.mxu0 %v3079_v45 }
 0x4a4   :  { %1379 = vmatmul.f32.vlgmr.msrb.gmra.mxu1 %v3079_v45 }
 0x4a6   :  { %v1920_v36 = vpop.eup %1919 }
 0x4a7   :  { %v1292_v35 = vmul.f32 %v1920_v36, %v1290_v55 }
 0x4a9   :  { %v3085_v57 = vadd.f32 %v1294_v17, %v1292_v35 }
 0x4ab   :  { %1336 = vmatmul.f32.gmra.mxu3 %v3085_v57  ;;  %1359 = vmatmul.f32.gmra.mxu0 %v3085_v57 }
 0x4ac   :  { %1382 = vmatmul.f32.gmra.mxu1 %v3085_v57 }
 0x520   :  { %v1357_v48 = vpop.f32.mrf.mxu0 }
 0x521   :  { %v1358_v28 = vadd.f32 %v1357_v48, %v3402_v49  ;;  %v1380_v27 = vpop.f32.mrf.mxu1 }
 0x522   :  { %v1381_v35 = vadd.f32 %v1380_v27, %v2508_v60 }
 0x523   :  { %v1426_v30 = vadd.f32 %v1358_v28, %v1312_v58 }
 0x525   :  { %v1744_v25 = vmul.f32 -1.442695, %v1426_v30 }
 0x526   :  { %v1334_v5 = vpop.f32.mrf.mxu3 }
 0x527   :  { %1921 = vpow2.f32 %v1744_v25  ;;  %v1335_v34 = vadd.f32 %v1334_v5, %v3399_v59 }
 0x528   :  { %v1360_v40 = vpop.f32.mrf.mxu0 }
 0x529   :  { %v1386_v9 = vadd.f32 %v1335_v34, %v1311_v47  ;;  %v1361_v19 = vadd.f32 %v1360_v40, %v3402_v49 }
 0x52b   :  { %v1742_v29 = vmul.f32 -1.442695, %v1386_v9  ;;  %v1427_v56 = vadd.f32 %v1361_v19, %v1315_v6  ;;  %v1310_v6 = vmul.f32 %v3093_v53, %v2505_v2  ;;  %v1383_v19 = vpop.f32.mrf.mxu1 }
 0x52d   :  { %v1922_v18 = vpop.eup %1921  ;;  %1923 = vpow2.f32 %v1742_v29  ;;  %v1745_v8 = vmul.f32 -1.442695, %v1427_v56 }
 0x52e   :  { %v3104_v61 = vadd.f32 1.0, %v1922_v18  ;;  %v1337_v51 = vpop.f32.mrf.mxu3 }
 0x52f   :  { %1925 = vpow2.f32 %v1745_v8  ;;  %v1338_v16 = vadd.f32 %v1337_v51, %v3399_v59 }
 0x530   :  { %1927 = vrcp.f32 %v3104_v61  ;;  %v1447_v3 = vand.u32 2147483648, %v3104_v61  ;;  %vm1441_vm6 = vweird.f32 %v3104_v61  ;;  %v1445_v5 = vand.u32 2147483647, %v3104_v61 }
 0x531   :  { %v1387_v13 = vadd.f32 %v1338_v16, %v1314_v4 }
 0x532   :  { %v1448_v18 = vor.u32 1.1754944e-38, %v1447_v3  ;;  %vm1446_vm11 = vcmp.eq.f32.partialorder %v1445_v5, 8.507059e+37  ;;  %v163_v3 = vld [vmem:[#allocation7 + $0x58] sm:$0xff] }
 0x533   :  { %v1924_v20 = vpop.eup %1923  ;;  %v1743_v15 = vmul.f32 -1.442695, %v1387_v13  ;;  %v1316_v13 = vadd.f32 %v1310_v6, %v2511_v38 }
 0x534   :  { %v1394_v0 = vadd.f32 1.0, %v1924_v20 }
 0x535   :  { %v1926_v12 = vpop.eup %1925  ;;  %1929 = vpow2.f32 %v1743_v15 }
 0x536   :  { %1931 = vrcp.f32 %v1394_v0  ;;  %v1928_v41 = vpop.eup %1927  ;;  %v3109_v32 = vadd.f32 1.0, %v1926_v12  ;;  %v1407_v31 = vand.u32 2147483648, %v1394_v0  ;;  %v1405_v22 = vand.u32 2147483647, %v1394_v0 }
 0x537   :  { %v1437_v11 = vmul.f32 %v1928_v41, %v3104_v61  ;;  %vm1401_vm2 = vweird.f32 %v1394_v0  ;;  %vm1442_vm5 = vweird.f32 %v1928_v41  ;;  %v1384_v61 = vadd.f32 %v1383_v19, %v2508_v60  ;;  %v160_v19 = vld [vmem:[#allocation7 + $0x40] sm:$0xff] }
 0x538   :  { %1933 = vrcp.f32 %v3109_v32  ;;  %v1408_v36 = vor.u32 1.1754944e-38, %v1407_v31  ;;  %vm1406_vm4 = vcmp.eq.f32.partialorder %v1405_v22, 8.507059e+37  ;;  %vm3123_vm8 = vmor %vm1441_vm6, %vm1442_vm5  ;;  %v1462_v20 = vand.u32 2147483648, %v3109_v32 }
 0x539   :  { %v1438_v14 = vsub.f32 1.0, %v1437_v11  ;;  %vm1456_vm14 = vweird.f32 %v3109_v32  ;;  %v1460_v12 = vand.u32 2147483647, %v3109_v32 }
 0x53b   :  { %v1930_v21 = vpop.eup %1929  ;;  %v1439_v62 = vmul.f32 %v1928_v41, %v1438_v14  ;;  %vm1461_vm0 = vcmp.eq.f32.partialorder %v1460_v12, 8.507059e+37  ;;  %v153_v12 = vld [vmem:[#allocation7 + $0x8] sm:$0xff] }
 0x53c   :  { %v1932_v26 = vpop.eup %1931  ;;  %v1395_v50 = vadd.f32 1.0, %v1930_v21 }
 0x53d   :  { %v1397_v24 = vmul.f32 %v1932_v26, %v1394_v0  ;;  %vm1402_vm1 = vweird.f32 %v1932_v26  ;;  %v1440_v28 = vadd.f32 %v1928_v41, %v1439_v62 }
 0x53e   :  { %1935 = vrcp.f32 %v1395_v50  ;;  %v3113_v23 = vpop.eup %1933  ;;  %vm1403_vm3 = vmor %vm1401_vm2, %vm1402_vm1  ;;  %v1422_v25 = vand.u32 2147483648, %v1395_v50  ;;  %v1420_v34 = vand.u32 2147483647, %v1395_v50  ;;  %vm1416_vm9 = vweird.f32 %v1395_v50 }
 0x53f   :  { %v1398_v7 = vsub.f32 1.0, %v1397_v24  ;;  %v1452_v54 = vmul.f32 %v3113_v23, %v3109_v32  ;;  %v1444_v1 = vsel %vm3123_vm8, %v1928_v41, %v1440_v28  ;;  %vm1457_vm13 = vweird.f32 %v3113_v23 }
 0x540   :  { %v1423_v8 = vor.u32 1.1754944e-38, %v1422_v25  ;;  %vm1421_vm12 = vcmp.eq.f32.partialorder %v1420_v34, 8.507059e+37  ;;  %v1449_v4 = vsel %vm1446_vm11, %v1448_v18, %v1444_v1  ;;  %vm1458_vm15 = vmor %vm1456_vm14, %vm1457_vm13  ;;  %v1463_v24 = vor.u32 1.1754944e-38, %v1462_v20  ;;  %v161_v34 = vld [vmem:[#allocation7 + $0x48] sm:$0xff] }
 0x541   :  { %v1399_v33 = vmul.f32 %v1932_v26, %v1398_v7  ;;  %v1453_v48 = vsub.f32 1.0, %v1452_v54  ;;  %v1472_v0 = vsub.f32 1.0, %v1449_v4  ;;  %v167_v54 = vld [vmem:[#allocation7 + $0x78] sm:$0xff] }
 0x542   :  { %1664 = vmatpush.msra.mxu1 %v167_v54  ;;  %1752 = vmatpush.msra.mxu2 %v167_v54 }
 0x543   :  { %v1400_v52 = vadd.f32 %v1932_v26, %v1399_v33  ;;  %v1454_v29 = vmul.f32 %v3113_v23, %v1453_v48 }
 0x544   :  { %v1936_v55 = vpop.eup %1935 }
 0x545   :  { %v1404_v17 = vsel %vm1403_vm3, %v1932_v26, %v1400_v52  ;;  %v1412_v46 = vmul.f32 %v1936_v55, %v1395_v50  ;;  %vm1417_vm7 = vweird.f32 %v1936_v55  ;;  %v1455_v53 = vadd.f32 %v3113_v23, %v1454_v29  ;;  %v159_v29 = vld [vmem:[#allocation7 + $0x38] sm:$0xff] }
 0x546   :  { %v1409_v58 = vsel %vm1406_vm4, %v1408_v36, %v1404_v17  ;;  %vm1418_vm10 = vmor %vm1416_vm9, %vm1417_vm7  ;;  %v1476_v26 = vmul.f32 %v1449_v4, %v3079_v45  ;;  %v165_v36 = vld [vmem:[#allocation7 + $0x68] sm:$0xff]  ;;  %v3160_v17 = vpop.permute.xlu1 %1485 }
 0x547   :  { %v1413_v30 = vsub.f32 1.0, %v1412_v46  ;;  %v1466_v63 = vmul.f32 %v1409_v58, %v1381_v35  ;;  %v1459_v50 = vsel %vm1458_vm15, %v3113_v23, %v1455_v53  ;;  %v3152_v23 = vpop.permute.xlu2 %1481  ;;  %v164_v58 = vld [vmem:[#allocation7 + $0x60] sm:$0xff] }
 0x548   :  { %v1464_v7 = vsel %vm1461_vm0, %v1463_v24, %v1459_v50  ;;  %v1488_v22 = vmul.f32 %v3152_v23, %v3397_v43  ;;  %v1489_v62 = vmul.f32 %v3152_v23, %v3400_v39  ;;  %v152_v50 = vld [vmem:[#allocation7] sm:$0xff] }
 0x549   :  { %v1414_v47 = vmul.f32 %v1936_v55, %v1413_v30  ;;  %v1468_v9 = vadd.f32 %v1466_v63, %v1313_v10  ;;  %v1473_v32 = vsub.f32 1.0, %v1464_v7  ;;  %v1477_v33 = vmul.f32 %v1464_v7, %v3085_v57  ;;  %v166_v57 = vld [vmem:[#allocation7 + $0x70] sm:$0xff] }
 0x54a   :  { %1665 = vmatpush.msra.mxu1 %v166_v57  ;;  %1753 = vmatpush.msra.mxu2 %v166_v57  ;;  %v1494_v44 = vadd.f32 %v1488_v22, %v3398_v42  ;;  %v1495_v35 = vadd.f32 %v1489_v62, %v3401_v37  ;;  %v1491_v30 = vmul.f32 %v3160_v17, %v3397_v43 }
 0x54b   :  { %v1415_v56 = vadd.f32 %v1936_v55, %v1414_v47  ;;  %1937 = vtanh.f32 %v1468_v9  ;;  %v1492_v63 = vmul.f32 %v3160_v17, %v3400_v39  ;;  %v162_v47 = vld [vmem:[#allocation7 + $0x50] sm:$0xff]  ;;  %v1490_v62 = vmul.f32 %v3152_v23, %v2505_v2 }
 0x54c   :  { %1666 = vmatpush.msra.mxu1 %v165_v36  ;;  %1754 = vmatpush.msra.mxu2 %v165_v36  ;;  %v1497_v40 = vadd.f32 %v1491_v30, %v3398_v42 }
 0x54d   :  { %v1419_v51 = vsel %vm1418_vm10, %v1936_v55, %v1415_v56  ;;  %v1498_v43 = vadd.f32 %v1492_v63, %v3401_v37  ;;  %v157_v37 = vld [vmem:[#allocation7 + $0x28] sm:$0xff] }
 0x54e   :  { %v1424_v16 = vsel %vm1421_vm12, %v1423_v8, %v1419_v51  ;;  %1667 = vmatpush.msra.mxu1 %v164_v58  ;;  %1755 = vmatpush.msra.mxu2 %v164_v58  ;;  %v158_v8 = vld [vmem:[#allocation7 + $0x30] sm:$0xff] }
 0x54f   :  { %v1467_v15 = vmul.f32 %v1424_v16, %v1384_v61 }
 0x550   :  { %1668 = vmatpush.msra.mxu1 %v163_v3  ;;  %1756 = vmatpush.msra.mxu2 %v163_v3 }
 0x551   :  { %v1938_v41 = vpop.eup %1937  ;;  %v1469_v11 = vadd.f32 %v1467_v15, %v1316_v13  ;;  %v154_v13 = vld [vmem:[#allocation7 + $0x10] sm:$0xff] }
 0x552   :  { %v1474_v21 = vmul.f32 %v1938_v41, %v1472_v0  ;;  %1669 = vmatpush.msra.mxu1 %v162_v47  ;;  %1757 = vmatpush.msra.mxu2 %v162_v47 }
 0x553   :  { %1939 = vtanh.f32 %v1469_v11 }
 0x554   :  { %v3141_v14 = vadd.f32 %v1476_v26, %v1474_v21  ;;  %1670 = vmatpush.msra.mxu1 %v161_v34  ;;  %1758 = vmatpush.msra.mxu2 %v161_v34 }
 0x556   :  { %1516 = vmatmul.f32.vlgmr.msrb.gmra.mxu2 %v3141_v14  ;;  %1539 = vmatmul.f32.vlgmr.msrb.gmra.mxu3 %v3141_v14 }
 0x557   :  { %1562 = vmatmul.f32.vlgmr.msra.gmra.mxu0 %v3141_v14  ;;  %1671 = vmatpush.msra.mxu1 %v160_v19 }
 0x558   :  { %1759 = vmatpush.msra.mxu2 %v160_v19 }
 0x559   :  { %v1940_v27 = vpop.eup %1939  ;;  %1672 = vmatpush.msra.mxu1 %v159_v29 }
 0x55a   :  { %v1475_v31 = vmul.f32 %v1940_v27, %v1473_v32  ;;  %1760 = vmatpush.msra.mxu2 %v159_v29 }
 0x55b   :  { %1673 = vmatpush.msra.mxu1 %v158_v8 }
 0x55c   :  { %v3147_v45 = vadd.f32 %v1477_v33, %v1475_v31  ;;  %1761 = vmatpush.msra.mxu2 %v158_v8 }
 0x55d   :  { %1674 = vmatpush.msra.mxu1 %v157_v37 }
 0x55e   :  { %1519 = vmatmul.f32.gmra.mxu2 %v3147_v45  ;;  %1542 = vmatmul.f32.gmra.mxu3 %v3147_v45 }
 0x55f   :  { %1565 = vmatmul.f32.gmra.mxu0 %v3147_v45  ;;  %1762 = vmatpush.msra.mxu2 %v157_v37 }
 0x5d4   :  { %v1563_v32 = vpop.f32.mrf.mxu0 }
 0x5d9   :  { %v1517_v52 = vpop.f32.mrf.mxu2  ;;  %v1540_v55 = vpop.f32.mrf.mxu3 }
 0x5da   :  { %v1518_v46 = vadd.f32 %v1517_v52, %v3399_v59  ;;  %v1541_v48 = vadd.f32 %v1540_v55, %v3402_v49  ;;  %v1564_v55 = vadd.f32 %v1563_v32, %v2508_v60 }
 0x5dc   :  { %v1569_v28 = vadd.f32 %v1518_v46, %v1494_v44  ;;  %v1609_v10 = vadd.f32 %v1541_v48, %v1495_v35 }
 0x5de   :  { %v1746_v25 = vmul.f32 -1.442695, %v1569_v28  ;;  %v1748_v5 = vmul.f32 -1.442695, %v1609_v10  ;;  %v1496_v28 = vadd.f32 %v1490_v62, %v2511_v38 }
 0x5e0   :  { %1941 = vpow2.f32 %v1746_v25 }
 0x5e1   :  { %1943 = vpow2.f32 %v1748_v5  ;;  %v1520_v9 = vpop.f32.mrf.mxu2  ;;  %v1543_v6 = vpop.f32.mrf.mxu3 }
 0x5e2   :  { %v1521_v1 = vadd.f32 %v1520_v9, %v3399_v59  ;;  %v1544_v39 = vadd.f32 %v1543_v6, %v3402_v49  ;;  %v156_v59 = vld [vmem:[#allocation7 + $0x20] sm:$0xff]  ;;  %v155_v49 = vld [vmem:[#allocation7 + $0x18] sm:$0xff]  ;;  %v1493_v9 = vmul.f32 %v3160_v17, %v2505_v2  ;;  %v1566_v6 = vpop.f32.mrf.mxu0 }
 0x5e3   :  { %1675 = vmatpush.msra.mxu1 %v156_v59  ;;  %1763 = vmatpush.msra.mxu2 %v156_v59 }
 0x5e4   :  { %v1570_v56 = vadd.f32 %v1521_v1, %v1497_v40  ;;  %v1610_v18 = vadd.f32 %v1544_v39, %v1498_v43 }
 0x5e5   :  { %1676 = vmatpush.msra.mxu1 %v155_v49  ;;  %1764 = vmatpush.msra.mxu2 %v155_v49 }
 0x5e6   :  { %v1942_v61 = vpop.eup %1941  ;;  %v1747_v42 = vmul.f32 -1.442695, %v1570_v56  ;;  %v1749_v16 = vmul.f32 -1.442695, %v1610_v18  ;;  %v1567_v18 = vadd.f32 %v1566_v6, %v2508_v60 }
 0x5e7   :  { %v1944_v51 = vpop.eup %1943  ;;  %v1577_v4 = vadd.f32 1.0, %v1942_v61  ;;  %1677 = vmatpush.msra.mxu1 %v154_v13  ;;  %1765 = vmatpush.msra.mxu2 %v154_v13 }
 0x5e8   :  { %v3172_v53 = vadd.f32 1.0, %v1944_v51  ;;  %1945 = vpow2.f32 %v1747_v42  ;;  %v1499_v42 = vadd.f32 %v1493_v9, %v2511_v38 }
 0x5e9   :  { %1947 = vrcp.f32 %v1577_v4  ;;  %1678 = vmatpush.msra.mxu1 %v153_v12  ;;  %1766 = vmatpush.msra.mxu2 %v153_v12  ;;  %v1590_v27 = vand.u32 2147483648, %v1577_v4  ;;  %v1588_v22 = vand.u32 2147483647, %v1577_v4  ;;  %vm1584_vm2 = vweird.f32 %v1577_v4 }
 0x5ea   :  { %1949 = vrcp.f32 %v3172_v53  ;;  %v1630_v10 = vand.u32 2147483648, %v3172_v53  ;;  %vm1624_vm6 = vweird.f32 %v3172_v53  ;;  %v1628_v25 = vand.u32 2147483647, %v3172_v53 }
 0x5eb   :  { %1951 = vpow2.f32 %v1749_v16  ;;  %1679 = vmatpush.msra.mxu1 %v152_v50  ;;  %1767 = vmatpush.msra.mxu2 %v152_v50  ;;  %v1591_v52 = vor.u32 1.1754944e-38, %v1590_v27  ;;  %vm1589_vm4 = vcmp.eq.f32.partialorder %v1588_v22, 8.507059e+37 }
 0x5ec   :  { %v1631_v39 = vor.u32 1.1754944e-38, %v1630_v10  ;;  %vm1629_vm11 = vcmp.eq.f32.partialorder %v1628_v25, 8.507059e+37 }
 0x5ee   :  { %v1946_v20 = vpop.eup %1945 }
 0x5ef   :  { %v1948_v15 = vpop.eup %1947  ;;  %v3175_v0 = vadd.f32 1.0, %v1946_v20 }
 0x5f0   :  { %v3177_v41 = vpop.eup %1949  ;;  %v1580_v11 = vmul.f32 %v1948_v15, %v1577_v4  ;;  %vm1585_vm1 = vweird.f32 %v1948_v15 }
 0x5f1   :  { %v1952_v21 = vpop.eup %1951  ;;  %v1620_v26 = vmul.f32 %v3177_v41, %v3172_v53  ;;  %1953 = vrcp.f32 %v3175_v0  ;;  %vm1586_vm3 = vmor %vm1584_vm2, %vm1585_vm1  ;;  %vm1625_vm5 = vweird.f32 %v3177_v41  ;;  %v1605_v3 = vand.u32 2147483648, %v3175_v0 }
 0x5f2   :  { %v1581_v24 = vsub.f32 1.0, %v1580_v11  ;;  %v3182_v7 = vadd.f32 1.0, %v1952_v21  ;;  %v1603_v47 = vand.u32 2147483647, %v3175_v0  ;;  %vm3199_vm8 = vmor %vm1624_vm6, %vm1625_vm5  ;;  %vm1599_vm9 = vweird.f32 %v3175_v0 }
 0x5f3   :  { %v1621_v31 = vsub.f32 1.0, %v1620_v26  ;;  %v1606_v29 = vor.u32 1.1754944e-38, %v1605_v3  ;;  %v2017_v26 = vld [vmem:[%s3227_s2] sm:$0xff] }
 0x5f4   :  { %v1582_v33 = vmul.f32 %v1948_v15, %v1581_v24  ;;  %1955 = vrcp.f32 %v3182_v7  ;;  %vm1604_vm12 = vcmp.eq.f32.partialorder %v1603_v47, 8.507059e+37  ;;  %v1645_v51 = vand.u32 2147483648, %v3182_v7 }
 0x5f5   :  { %v1622_v54 = vmul.f32 %v3177_v41, %v1621_v31  ;;  %vm1639_vm14 = vweird.f32 %v3182_v7  ;;  %v1643_v37 = vand.u32 2147483647, %v3182_v7  ;;  %v1663_v50 = vperm.slane %v2017_v26, 3 }
 0x5f6   :  { %v1583_v57 = vadd.f32 %v1948_v15, %v1582_v33  ;;  %v1646_v20 = vor.u32 1.1754944e-38, %v1645_v51 }
 0x5f7   :  { %v1954_v44 = vpop.eup %1953  ;;  %v1623_v48 = vadd.f32 %v3177_v41, %v1622_v54  ;;  %vm1644_vm0 = vcmp.eq.f32.partialorder %v1643_v37, 8.507059e+37 }
 0x5f8   :  { %v1587_v36 = vsel %vm1586_vm3, %v1948_v15, %v1583_v57  ;;  %v1595_v35 = vmul.f32 %v1954_v44, %v3175_v0  ;;  %vm1600_vm7 = vweird.f32 %v1954_v44 }
 0x5f9   :  { %v1592_v46 = vsel %vm1589_vm4, %v1591_v52, %v1587_v36  ;;  %v1627_v43 = vsel %vm3199_vm8, %v3177_v41, %v1623_v48  ;;  %vm1601_vm10 = vmor %vm1599_vm9, %vm1600_vm7 }
 0x5fa   :  { %v1956_v58 = vpop.eup %1955  ;;  %v1596_v23 = vsub.f32 1.0, %v1595_v35  ;;  %v1649_v30 = vmul.f32 %v1592_v46, %v1564_v55  ;;  %v1632_v2 = vsel %vm1629_vm11, %v1631_v39, %v1627_v43 }
 0x5fb   :  { %v1635_v63 = vmul.f32 %v1956_v58, %v3182_v7  ;;  %vm1640_vm13 = vweird.f32 %v1956_v58  ;;  %v1655_v16 = vsub.f32 1.0, %v1632_v2  ;;  %v1659_v49 = vmul.f32 %v1632_v2, %v3141_v14 }
 0x5fc   :  { %v1597_v5 = vmul.f32 %v1954_v44, %v1596_v23  ;;  %v1651_v40 = vadd.f32 %v1649_v30, %v1496_v28  ;;  %vm1641_vm15 = vmor %vm1639_vm14, %vm1640_vm13 }
 0x5fd   :  { %v1636_v19 = vsub.f32 1.0, %v1635_v63 }
 0x5fe   :  { %v1598_v1 = vadd.f32 %v1954_v44, %v1597_v5  ;;  %1957 = vtanh.f32 %v1651_v40 }
 0x5ff   :  { %v1637_v56 = vmul.f32 %v1956_v58, %v1636_v19 }
 0x600   :  { %v1602_v8 = vsel %vm1601_vm10, %v1954_v44, %v1598_v1 }
 0x601   :  { %v1607_v17 = vsel %vm1604_vm12, %v1606_v29, %v1602_v8  ;;  %v1638_v61 = vadd.f32 %v1956_v58, %v1637_v56 }
 0x602   :  { %v1650_v4 = vmul.f32 %v1607_v17, %v1567_v18 }
 0x603   :  { %v1642_v13 = vsel %vm1641_vm15, %v1956_v58, %v1638_v61 }
 0x604   :  { %v1958_v53 = vpop.eup %1957  ;;  %v1652_v59 = vadd.f32 %v1650_v4, %v1499_v42  ;;  %v1647_v38 = vsel %vm1644_vm0, %v1646_v20, %v1642_v13 }
 0x605   :  { %v1657_v60 = vmul.f32 %v1958_v53, %v1655_v16  ;;  %v1656_v0 = vsub.f32 1.0, %v1647_v38  ;;  %v1660_v11 = vmul.f32 %v1647_v38, %v3147_v45 }
 0x606   :  { %1959 = vtanh.f32 %v1652_v59 }
 0x607   :  { %v1661_v15 = vadd.f32 %v1659_v49, %v1657_v60 }
 0x609   :  { %1680 = vmatmul.f32.vlgmr.msra.gmra.mxu1 %v1661_v15 }
 0x60c   :  { %v1960_v12 = vpop.eup %1959 }
 0x60d   :  { %v1658_v41 = vmul.f32 %v1960_v12, %v1656_v0 }
 0x60f   :  { %v1662_v21 = vadd.f32 %v1660_v11, %v1658_v41 }
 0x611   :  { %1683 = vmatmul.f32.vlgmr.msra.gmra.mxu2 %v1662_v21 }
 0x686   :  { %v1681_v14 = vpop.f32.mrf.mxu1 }
 0x687   :  { %v1682_v24 = vadd.f32 %v1681_v14, %v1663_v50 }
 0x689   :  { %1687 = vst [vmem:[#allocation8] sm:$0xff] %v1682_v24 }
 0x694   :  { %v1684_v7 = vpop.f32.mrf.mxu2 }
 0x695   :  { %v1685_v32 = vadd.f32 %v1684_v7, %v1663_v50 }
 0x697   :  { %1688 = vst [vmem:[#allocation8 + $0x8] sm:$0xff] %v1685_v32 }
 0x698   :  { %1701 = dma.vmem_to_hbm [thread:$0]  %s1694_s19, 256, %s1696_s22, [#allocation4], %s2127_s11, %s2127_s11, %s2128_s0  }
 0x699   :  { %2118 = dma.done.wait [#allocation4], 256  }
 0x69a   :  { %2119 = vsyncadd [#allocation4], 4294967040 }
 0x69b   :  { %1706 = vsyncpa [#allocation3], 1 }
 0x69c   :  { %1707 = vsyncpa [#allocation6], 1 }
 0x69d   :  { %1708 = vsyncpa [#allocation4], 1 }

</bundles_post_ra>
